<compile_context>
chip_gen: v7x
topology: tpu7x:2x2x1
jax: 0.10.0
libtpu: 0.0.40
codegen_flags: <defaults>
</compile_context>

<pallas_src>
import functools

import jax
import jax.numpy as jnp
from jax import lax
from jax.experimental import pallas as pl
from jax.experimental.pallas import tpu as pltpu


def _ca_kernel(xp_ref, mask_ref, pool_ref, scat_ref,
               w1_ref, b1_ref, w2_ref, b2_ref,
               wd1_ref, bd1_ref, wd2_ref, bd2_ref,
               out_ref, col_ref, *, wp):
    C, L = xp_ref.shape
    f32 = jnp.float32
    hi = lax.Precision.HIGHEST
    taps = [dh * wp + dw for dh in (-1, 0, 1) for dw in (-1, 0, 1)]

    def conv3x3(a, w_ref):
        # im2col: stack the 9 lane-shifted copies along the sublane
        # (contraction) axis, then a single (C, 9C) @ (9C, L) MXU matmul with
        # bf16 operands and f32 accumulation.
        for t, s in enumerate(taps):
            col_ref[t * C:(t + 1) * C, :] = pltpu.roll(a, shift=(-s) % L, axis=1)
        return jnp.dot(w_ref[...], col_ref[...].astype(jnp.bfloat16),
                       preferred_element_type=f32)

    xp = xp_ref[...]          # (C, L) f32, zero-padded, batch along lanes
    mask = mask_ref[...]      # (1, L)  1.0 on interior, 0.0 on each pad ring

    # self.process: conv3x3 -> ReLU -> conv3x3
    o1 = conv3x3(xp, w1_ref) + b1_ref[...]
    o1 = jnp.maximum(o1, 0.0) * mask      # ReLU + re-zero pad ring (f32 VPU);
                                          # keeps conv2 / pooling exact.
    o2 = conv3x3(o1, w2_ref)              # conv2 bias folded into the pool.

    # per-batch global average pool over the H*W interior lanes: (C, B)
    y = jnp.dot(o2, pool_ref[...], precision=hi,
                preferred_element_type=f32) + b2_ref[...]

    # self.conv_du: 1x1 conv -> ReLU -> 1x1 conv -> sigmoid  (tiny f32 dots)
    d1 = jnp.maximum(
        jnp.dot(wd1_ref[...], y, precision=hi, preferred_element_type=f32)
        + bd1_ref[...], 0.0)                                      # (Cr, B)
    z = jax.nn.sigmoid(
        jnp.dot(wd2_ref[...], d1, precision=hi, preferred_element_type=f32)
        + bd2_ref[...])                                           # (C, B)

    # return z*y + x: broadcast the per-batch (C, B) scalars back over each
    # batch's lanes via the 0/1 scatter matrix; pad-ring lanes are discarded
    # by the wrapper.  Output last dim L is a multiple of 128 -> dense stores.
    out_ref[...] = xp + jnp.dot(z * y, scat_ref[...], precision=hi,
                                preferred_element_type=f32)


def ca_layer_forward(x, params):
    x = x.astype(jnp.float32)
    B, C, H, W = x.shape
    Hp, Wp = H + 2, W + 2
    Np = Hp * Wp
    L = B * Np
    Cr = params["wd1"].shape[0]

    # zero-pad each image; concatenate the batch along the flattened lane axis
    xp = jnp.pad(x, ((0, 0), (0, 0), (1, 1), (1, 1)))            # (B, C, Hp, Wp)
    xp = jnp.transpose(xp, (1, 0, 2, 3)).reshape(C, L)           # (C, L)

    # im2col-folded 3x3 weights: (C, 9C), second axis ordered (kh, kw, cin),
    # bf16 for the MXU.
    w1f = jnp.transpose(params["w1"], (0, 2, 3, 1)).reshape(C, 9 * C)
    w2f = jnp.transpose(params["w2"], (0, 2, 3, 1)).reshape(C, 9 * C)
    w1f = w1f.astype(jnp.bfloat16)
    w2f = w2f.astype(jnp.bfloat16)
    b1c = params["b1"].reshape(C, 1).astype(jnp.float32)
    b2c = params["b2"].reshape(C, 1).astype(jnp.float32)
    wd1 = params["wd1"].astype(jnp.float32)                      # (Cr, C)
    bd1c = params["bd1"].reshape(Cr, 1).astype(jnp.float32)
    wd2 = params["wd2"].astype(jnp.float32)                      # (C, Cr)
    bd2c = params["bd2"].reshape(C, 1).astype(jnp.float32)

    # lane bookkeeping: interior mask, per-batch pooling / scatter matrices
    lane = jnp.arange(L)
    seg, p = lane // Np, lane % Np
    ph, pw = p // Wp, p % Wp
    interior = (ph >= 1) & (ph <= H) & (pw >= 1) & (pw <= W)
    mask = interior.astype(jnp.float32).reshape(1, L)            # (1, L)
    same_seg = seg[:, None] == jnp.arange(B)[None, :]            # (L, B)
    pool = (interior[:, None] & same_seg).astype(jnp.float32) / float(H * W)
    scat = jnp.transpose(same_seg).astype(jnp.float32)           # (B, L)

    kernel = functools.partial(_ca_kernel, wp=Wp)

    def fb(a):   # full-array block, single grid step
        nd = a.ndim
        return pl.BlockSpec(a.shape, lambda i, nd=nd: (0,) * nd)

    out_flat = pl.pallas_call(
        kernel,
        out_shape=jax.ShapeDtypeStruct((C, L), jnp.float32),
        grid_spec=pltpu.PrefetchScalarGridSpec(
            num_scalar_prefetch=0,
            grid=(1,),
            in_specs=[fb(xp), fb(mask), fb(pool), fb(scat),
                      fb(w1f), fb(b1c), fb(w2f), fb(b2c),
                      fb(wd1), fb(bd1c), fb(wd2), fb(bd2c)],
            out_specs=pl.BlockSpec((C, L), lambda i: (0, 0)),
            scratch_shapes=[pltpu.VMEM((9 * C, L), jnp.float32)],  # im2col buf
        ),
        compiler_params=pltpu.CompilerParams(
            dimension_semantics=("arbitrary",)),
    )(xp, mask, pool, scat, w1f, b1c, w2f, b2c, wd1, bd1c, wd2, bd2c)

    # slice the interior out of the lane-dense padded output, back to NCHW
    out = out_flat.reshape(C, B, Hp, Wp)[:, :, 1:H + 1, 1:W + 1]
    return jnp.transpose(out, (1, 0, 2, 3))


def ref_ca_layer(x, p):
    """Pure-JAX f32 reference matching the PyTorch forward (NCHW)."""
    dn = ("NCHW", "OIHW", "NCHW")
    hi = lax.Precision.HIGHEST
    y = lax.conv_general_dilated(x, p["w1"], (1, 1), "SAME",
                                 dimension_numbers=dn, precision=hi)
    y = jnp.maximum(y + p["b1"][None, :, None, None], 0.0)
    y = lax.conv_general_dilated(y, p["w2"], (1, 1), "SAME",
                                 dimension_numbers=dn, precision=hi)
    y = y + p["b2"][None, :, None, None]
    y = jnp.mean(y, axis=(2, 3), keepdims=True)                    # (B,C,1,1)
    d = (jnp.einsum("oc,bcij->boij", p["wd1"], y, precision=hi)
         + p["bd1"][None, :, None, None])
    d = jnp.maximum(d, 0.0)
    z = (jnp.einsum("oc,bcij->boij", p["wd2"], d, precision=hi)
         + p["bd2"][None, :, None, None])
    z = jax.nn.sigmoid(z)
    return z * y + x


def init_params(key, channel, reduction):
    cr = channel // reduction
    ks = jax.random.split(key, 8)

    def nrm(k, shape, scale):
        return scale * jax.random.normal(k, shape, jnp.float32)

    return dict(
        w1=nrm(ks[0], (channel, channel, 3, 3), 0.1),
        b1=nrm(ks[1], (channel,), 0.1),
        w2=nrm(ks[2], (channel, channel, 3, 3), 0.1),
        b2=nrm(ks[3], (channel,), 0.1),
        wd1=nrm(ks[4], (cr, channel), 0.2),
        bd1=nrm(ks[5], (cr,), 0.1),
        wd2=nrm(ks[6], (channel, cr), 0.2),
        bd2=nrm(ks[7], (channel,), 0.1),
    )


if __name__ == "__main__":
    B, C, H, W, reduction = 2, 8, 14, 14, 2
    key = jax.random.PRNGKey(0)
    kx, kp = jax.random.split(key)
    x = jax.random.normal(kx, (B, C, H, W), jnp.float32)
    params = init_params(kp, C, reduction)

    out = jax.block_until_ready(ca_layer_forward(x, params))
    ref = jax.block_until_ready(ref_ca_layer(x, params))

    assert out.shape == x.shape and out.dtype == x.dtype
    max_err = float(jnp.max(jnp.abs(out - ref)))
    # bf16 MXU operands with f32 accumulation vs an f32 HIGHEST reference.
    if not bool(jnp.allclose(out, ref, atol=2e-2, rtol=2e-2)):
        raise AssertionError(f"kernel/reference mismatch, max abs err={max_err}")
    print("KERNEL_OK")
</pallas_src>

<mosaic_0001>
module attributes {stable_mosaic.version = 11 : i64} {
  func.func @_ca_kernel(%arg0: i32, %arg1: memref<8x512xf32, #tpu.memory_space<vmem>>, %arg2: memref<1x512xf32, #tpu.memory_space<vmem>>, %arg3: memref<512x2xf32, #tpu.memory_space<vmem>>, %arg4: memref<2x512xf32, #tpu.memory_space<vmem>>, %arg5: memref<8x72xbf16, #tpu.memory_space<vmem>>, %arg6: memref<8x1xf32, #tpu.memory_space<vmem>>, %arg7: memref<8x72xbf16, #tpu.memory_space<vmem>>, %arg8: memref<8x1xf32, #tpu.memory_space<vmem>>, %arg9: memref<4x8xf32, #tpu.memory_space<vmem>>, %arg10: memref<4x1xf32, #tpu.memory_space<vmem>>, %arg11: memref<8x4xf32, #tpu.memory_space<vmem>>, %arg12: memref<8x1xf32, #tpu.memory_space<vmem>>, %arg13: memref<8x512xf32, #tpu.memory_space<vmem>>, %arg14: memref<72x512xf32, #tpu.memory_space<vmem>>) attributes {dimension_semantics = [#tpu.dimension_semantics<arbitrary>], iteration_bounds = array<i64: 1>, scalar_prefetch = 0 : i64, scratch_operands = 1 : i64, tpu.core_type = #tpu.core_type<tc>, window_params = [{pipeline_mode = #tpu.pipeline_mode<synchronous>, transform_indices = @transform_0, window_bounds = array<i64: 8, 512>}, {pipeline_mode = #tpu.pipeline_mode<synchronous>, transform_indices = @transform_1, window_bounds = array<i64: 1, 512>}, {pipeline_mode = #tpu.pipeline_mode<synchronous>, transform_indices = @transform_2, window_bounds = array<i64: 512, 2>}, {pipeline_mode = #tpu.pipeline_mode<synchronous>, transform_indices = @transform_3, window_bounds = array<i64: 2, 512>}, {pipeline_mode = #tpu.pipeline_mode<synchronous>, transform_indices = @transform_4, window_bounds = array<i64: 8, 72>}, {pipeline_mode = #tpu.pipeline_mode<synchronous>, transform_indices = @transform_5, window_bounds = array<i64: 8, 1>}, {pipeline_mode = #tpu.pipeline_mode<synchronous>, transform_indices = @transform_6, window_bounds = array<i64: 8, 72>}, {pipeline_mode = #tpu.pipeline_mode<synchronous>, transform_indices = @transform_7, window_bounds = array<i64: 8, 1>}, {pipeline_mode = #tpu.pipeline_mode<synchronous>, transform_indices = @transform_8, window_bounds = array<i64: 4, 8>}, {pipeline_mode = #tpu.pipeline_mode<synchronous>, transform_indices = @transform_9, window_bounds = array<i64: 4, 1>}, {pipeline_mode = #tpu.pipeline_mode<synchronous>, transform_indices = @transform_10, window_bounds = array<i64: 8, 4>}, {pipeline_mode = #tpu.pipeline_mode<synchronous>, transform_indices = @transform_11, window_bounds = array<i64: 8, 1>}, {pipeline_mode = #tpu.pipeline_mode<synchronous>, transform_indices = @transform_12, window_bounds = array<i64: 8, 512>}]} {
    %c0 = arith.constant 0 : index
    %c0_0 = arith.constant 0 : index
    %0 = vector.load %arg1[%c0, %c0_0] : memref<8x512xf32, #tpu.memory_space<vmem>>, vector<8x512xf32>
    %c0_1 = arith.constant 0 : index
    %c0_2 = arith.constant 0 : index
    %1 = vector.load %arg2[%c0_1, %c0_2] : memref<1x512xf32, #tpu.memory_space<vmem>>, vector<1x512xf32>
    %c17_i32 = arith.constant 17 : i32
    %2 = tpu.dynamic_rotate %0 by %c17_i32 dim 1 : vector<8x512xf32>, i32 -> vector<8x512xf32>
    %c0_3 = arith.constant 0 : index
    %c0_4 = arith.constant 0 : index
    %3 = vector.load %arg14[%c0_3, %c0_4] : memref<72x512xf32, #tpu.memory_space<vmem>>, vector<8x512xf32>
    tpu.vector_store %arg14[%c0_3, %c0_4], %2 {strides = array<i32>} : memref<72x512xf32, #tpu.memory_space<vmem>>, vector<8x512xf32>,
    %c16_i32 = arith.constant 16 : i32
    %4 = tpu.dynamic_rotate %0 by %c16_i32 dim 1 : vector<8x512xf32>, i32 -> vector<8x512xf32>
    %c8 = arith.constant 8 : index
    %c0_5 = arith.constant 0 : index
    %5 = vector.load %arg14[%c8, %c0_5] : memref<72x512xf32, #tpu.memory_space<vmem>>, vector<8x512xf32>
    tpu.vector_store %arg14[%c8, %c0_5], %4 {strides = array<i32>} : memref<72x512xf32, #tpu.memory_space<vmem>>, vector<8x512xf32>,
    %c15_i32 = arith.constant 15 : i32
    %6 = tpu.dynamic_rotate %0 by %c15_i32 dim 1 : vector<8x512xf32>, i32 -> vector<8x512xf32>
    %c16 = arith.constant 16 : index
    %c0_6 = arith.constant 0 : index
    %7 = vector.load %arg14[%c16, %c0_6] : memref<72x512xf32, #tpu.memory_space<vmem>>, vector<8x512xf32>
    tpu.vector_store %arg14[%c16, %c0_6], %6 {strides = array<i32>} : memref<72x512xf32, #tpu.memory_space<vmem>>, vector<8x512xf32>,
    %c1_i32 = arith.constant 1 : i32
    %8 = tpu.dynamic_rotate %0 by %c1_i32 dim 1 : vector<8x512xf32>, i32 -> vector<8x512xf32>
    %c24 = arith.constant 24 : index
    %c0_7 = arith.constant 0 : index
    %9 = vector.load %arg14[%c24, %c0_7] : memref<72x512xf32, #tpu.memory_space<vmem>>, vector<8x512xf32>
    tpu.vector_store %arg14[%c24, %c0_7], %8 {strides = array<i32>} : memref<72x512xf32, #tpu.memory_space<vmem>>, vector<8x512xf32>,
    %c0_i32 = arith.constant 0 : i32
    %10 = tpu.dynamic_rotate %0 by %c0_i32 dim 1 : vector<8x512xf32>, i32 -> vector<8x512xf32>
    %c32 = arith.constant 32 : index
    %c0_8 = arith.constant 0 : index
    %11 = vector.load %arg14[%c32, %c0_8] : memref<72x512xf32, #tpu.memory_space<vmem>>, vector<8x512xf32>
    tpu.vector_store %arg14[%c32, %c0_8], %10 {strides = array<i32>} : memref<72x512xf32, #tpu.memory_space<vmem>>, vector<8x512xf32>,
    %c511_i32 = arith.constant 511 : i32
    %12 = tpu.dynamic_rotate %0 by %c511_i32 dim 1 : vector<8x512xf32>, i32 -> vector<8x512xf32>
    %c40 = arith.constant 40 : index
    %c0_9 = arith.constant 0 : index
    %13 = vector.load %arg14[%c40, %c0_9] : memref<72x512xf32, #tpu.memory_space<vmem>>, vector<8x512xf32>
    tpu.vector_store %arg14[%c40, %c0_9], %12 {strides = array<i32>} : memref<72x512xf32, #tpu.memory_space<vmem>>, vector<8x512xf32>,
    %c497_i32 = arith.constant 497 : i32
    %14 = tpu.dynamic_rotate %0 by %c497_i32 dim 1 : vector<8x512xf32>, i32 -> vector<8x512xf32>
    %c48 = arith.constant 48 : index
    %c0_10 = arith.constant 0 : index
    %15 = vector.load %arg14[%c48, %c0_10] : memref<72x512xf32, #tpu.memory_space<vmem>>, vector<8x512xf32>
    tpu.vector_store %arg14[%c48, %c0_10], %14 {strides = array<i32>} : memref<72x512xf32, #tpu.memory_space<vmem>>, vector<8x512xf32>,
    %c496_i32 = arith.constant 496 : i32
    %16 = tpu.dynamic_rotate %0 by %c496_i32 dim 1 : vector<8x512xf32>, i32 -> vector<8x512xf32>
    %c56 = arith.constant 56 : index
    %c0_11 = arith.constant 0 : index
    %17 = vector.load %arg14[%c56, %c0_11] : memref<72x512xf32, #tpu.memory_space<vmem>>, vector<8x512xf32>
    tpu.vector_store %arg14[%c56, %c0_11], %16 {strides = array<i32>} : memref<72x512xf32, #tpu.memory_space<vmem>>, vector<8x512xf32>,
    %c495_i32 = arith.constant 495 : i32
    %18 = tpu.dynamic_rotate %0 by %c495_i32 dim 1 : vector<8x512xf32>, i32 -> vector<8x512xf32>
    %c64 = arith.constant 64 : index
    %c0_12 = arith.constant 0 : index
    %19 = vector.load %arg14[%c64, %c0_12] : memref<72x512xf32, #tpu.memory_space<vmem>>, vector<8x512xf32>
    tpu.vector_store %arg14[%c64, %c0_12], %18 {strides = array<i32>} : memref<72x512xf32, #tpu.memory_space<vmem>>, vector<8x512xf32>,
    %c0_13 = arith.constant 0 : index
    %c0_14 = arith.constant 0 : index
    %20 = vector.load %arg5[%c0_13, %c0_14] : memref<8x72xbf16, #tpu.memory_space<vmem>>, vector<8x72xbf16>
    %c0_15 = arith.constant 0 : index
    %c0_16 = arith.constant 0 : index
    %21 = vector.load %arg14[%c0_15, %c0_16] : memref<72x512xf32, #tpu.memory_space<vmem>>, vector<72x512xf32>
    %22 = arith.truncf %21 : vector<72x512xf32> to vector<72x512xbf16>
    %cst = arith.constant dense<0.000000e+00> : vector<8x512xf32>
    %23 = tpu.matmul %20, %22, %cst {dimension_numbers = #tpu.dot_dimension_numbers<[1], [0], [0], [1], [0, 0, 1, 1], [], []>} : vector<8x72xbf16>, vector<72x512xbf16>, vector<8x512xf32> -> vector<8x512xf32>
    %c0_17 = arith.constant 0 : index
    %c0_18 = arith.constant 0 : index
    %24 = vector.load %arg6[%c0_17, %c0_18] : memref<8x1xf32, #tpu.memory_space<vmem>>, vector<8x1xf32>
    %25 = vector.broadcast %24 : vector<8x1xf32> to vector<8x512xf32>
    %26 = arith.addf %23, %25 : vector<8x512xf32>
    %cst_19 = arith.constant 0.000000e+00 : f32
    %27 = vector.broadcast %cst_19 : f32 to vector<8x512xf32>
    %28 = arith.maximumf %26, %27 : vector<8x512xf32>
    %29 = vector.broadcast %1 : vector<1x512xf32> to vector<8x512xf32>
    %30 = arith.mulf %28, %29 : vector<8x512xf32>
    %c17_i32_20 = arith.constant 17 : i32
    %31 = tpu.dynamic_rotate %30 by %c17_i32_20 dim 1 : vector<8x512xf32>, i32 -> vector<8x512xf32>
    %c0_21 = arith.constant 0 : index
    %c0_22 = arith.constant 0 : index
    %32 = vector.load %arg14[%c0_21, %c0_22] : memref<72x512xf32, #tpu.memory_space<vmem>>, vector<8x512xf32>
    tpu.vector_store %arg14[%c0_21, %c0_22], %31 {strides = array<i32>} : memref<72x512xf32, #tpu.memory_space<vmem>>, vector<8x512xf32>,
    %c16_i32_23 = arith.constant 16 : i32
    %33 = tpu.dynamic_rotate %30 by %c16_i32_23 dim 1 : vector<8x512xf32>, i32 -> vector<8x512xf32>
    %c8_24 = arith.constant 8 : index
    %c0_25 = arith.constant 0 : index
    %34 = vector.load %arg14[%c8_24, %c0_25] : memref<72x512xf32, #tpu.memory_space<vmem>>, vector<8x512xf32>
    tpu.vector_store %arg14[%c8_24, %c0_25], %33 {strides = array<i32>} : memref<72x512xf32, #tpu.memory_space<vmem>>, vector<8x512xf32>,
    %c15_i32_26 = arith.constant 15 : i32
    %35 = tpu.dynamic_rotate %30 by %c15_i32_26 dim 1 : vector<8x512xf32>, i32 -> vector<8x512xf32>
    %c16_27 = arith.constant 16 : index
    %c0_28 = arith.constant 0 : index
    %36 = vector.load %arg14[%c16_27, %c0_28] : memref<72x512xf32, #tpu.memory_space<vmem>>, vector<8x512xf32>
    tpu.vector_store %arg14[%c16_27, %c0_28], %35 {strides = array<i32>} : memref<72x512xf32, #tpu.memory_space<vmem>>, vector<8x512xf32>,
    %c1_i32_29 = arith.constant 1 : i32
    %37 = tpu.dynamic_rotate %30 by %c1_i32_29 dim 1 : vector<8x512xf32>, i32 -> vector<8x512xf32>
    %c24_30 = arith.constant 24 : index
    %c0_31 = arith.constant 0 : index
    %38 = vector.load %arg14[%c24_30, %c0_31] : memref<72x512xf32, #tpu.memory_space<vmem>>, vector<8x512xf32>
    tpu.vector_store %arg14[%c24_30, %c0_31], %37 {strides = array<i32>} : memref<72x512xf32, #tpu.memory_space<vmem>>, vector<8x512xf32>,
    %c0_i32_32 = arith.constant 0 : i32
    %39 = tpu.dynamic_rotate %30 by %c0_i32_32 dim 1 : vector<8x512xf32>, i32 -> vector<8x512xf32>
    %c32_33 = arith.constant 32 : index
    %c0_34 = arith.constant 0 : index
    %40 = vector.load %arg14[%c32_33, %c0_34] : memref<72x512xf32, #tpu.memory_space<vmem>>, vector<8x512xf32>
    tpu.vector_store %arg14[%c32_33, %c0_34], %39 {strides = array<i32>} : memref<72x512xf32, #tpu.memory_space<vmem>>, vector<8x512xf32>,
    %c511_i32_35 = arith.constant 511 : i32
    %41 = tpu.dynamic_rotate %30 by %c511_i32_35 dim 1 : vector<8x512xf32>, i32 -> vector<8x512xf32>
    %c40_36 = arith.constant 40 : index
    %c0_37 = arith.constant 0 : index
    %42 = vector.load %arg14[%c40_36, %c0_37] : memref<72x512xf32, #tpu.memory_space<vmem>>, vector<8x512xf32>
    tpu.vector_store %arg14[%c40_36, %c0_37], %41 {strides = array<i32>} : memref<72x512xf32, #tpu.memory_space<vmem>>, vector<8x512xf32>,
    %c497_i32_38 = arith.constant 497 : i32
    %43 = tpu.dynamic_rotate %30 by %c497_i32_38 dim 1 : vector<8x512xf32>, i32 -> vector<8x512xf32>
    %c48_39 = arith.constant 48 : index
    %c0_40 = arith.constant 0 : index
    %44 = vector.load %arg14[%c48_39, %c0_40] : memref<72x512xf32, #tpu.memory_space<vmem>>, vector<8x512xf32>
    tpu.vector_store %arg14[%c48_39, %c0_40], %43 {strides = array<i32>} : memref<72x512xf32, #tpu.memory_space<vmem>>, vector<8x512xf32>,
    %c496_i32_41 = arith.constant 496 : i32
    %45 = tpu.dynamic_rotate %30 by %c496_i32_41 dim 1 : vector<8x512xf32>, i32 -> vector<8x512xf32>
    %c56_42 = arith.constant 56 : index
    %c0_43 = arith.constant 0 : index
    %46 = vector.load %arg14[%c56_42, %c0_43] : memref<72x512xf32, #tpu.memory_space<vmem>>, vector<8x512xf32>
    tpu.vector_store %arg14[%c56_42, %c0_43], %45 {strides = array<i32>} : memref<72x512xf32, #tpu.memory_space<vmem>>, vector<8x512xf32>,
    %c495_i32_44 = arith.constant 495 : i32
    %47 = tpu.dynamic_rotate %30 by %c495_i32_44 dim 1 : vector<8x512xf32>, i32 -> vector<8x512xf32>
    %c64_45 = arith.constant 64 : index
    %c0_46 = arith.constant 0 : index
    %48 = vector.load %arg14[%c64_45, %c0_46] : memref<72x512xf32, #tpu.memory_space<vmem>>, vector<8x512xf32>
    tpu.vector_store %arg14[%c64_45, %c0_46], %47 {strides = array<i32>} : memref<72x512xf32, #tpu.memory_space<vmem>>, vector<8x512xf32>,
    %c0_47 = arith.constant 0 : index
    %c0_48 = arith.constant 0 : index
    %49 = vector.load %arg7[%c0_47, %c0_48] : memref<8x72xbf16, #tpu.memory_space<vmem>>, vector<8x72xbf16>
    %c0_49 = arith.constant 0 : index
    %c0_50 = arith.constant 0 : index
    %50 = vector.load %arg14[%c0_49, %c0_50] : memref<72x512xf32, #tpu.memory_space<vmem>>, vector<72x512xf32>
    %51 = arith.truncf %50 : vector<72x512xf32> to vector<72x512xbf16>
    %cst_51 = arith.constant dense<0.000000e+00> : vector<8x512xf32>
    %52 = tpu.matmul %49, %51, %cst_51 {dimension_numbers = #tpu.dot_dimension_numbers<[1], [0], [0], [1], [0, 0, 1, 1], [], []>} : vector<8x72xbf16>, vector<72x512xbf16>, vector<8x512xf32> -> vector<8x512xf32>
    %c0_52 = arith.constant 0 : index
    %c0_53 = arith.constant 0 : index
    %53 = vector.load %arg3[%c0_52, %c0_53] : memref<512x2xf32, #tpu.memory_space<vmem>>, vector<512x2xf32>
    %cst_54 = arith.constant dense<0.000000e+00> : vector<8x2xf32>
    %54 = tpu.matmul %52, %53, %cst_54 {dimension_numbers = #tpu.dot_dimension_numbers<[1], [0], [0], [1], [0, 0, 1, 1], [], []>, precision = #tpu.contract_precision<fp32>} : vector<8x512xf32>, vector<512x2xf32>, vector<8x2xf32> -> vector<8x2xf32>
    %c0_55 = arith.constant 0 : index
    %c0_56 = arith.constant 0 : index
    %55 = vector.load %arg8[%c0_55, %c0_56] : memref<8x1xf32, #tpu.memory_space<vmem>>, vector<8x1xf32>
    %56 = vector.broadcast %55 : vector<8x1xf32> to vector<8x2xf32>
    %57 = arith.addf %54, %56 : vector<8x2xf32>
    %c0_57 = arith.constant 0 : index
    %c0_58 = arith.constant 0 : index
    %58 = vector.load %arg9[%c0_57, %c0_58] : memref<4x8xf32, #tpu.memory_space<vmem>>, vector<4x8xf32>
    %cst_59 = arith.constant dense<0.000000e+00> : vector<4x2xf32>
    %59 = tpu.matmul %58, %57, %cst_59 {dimension_numbers = #tpu.dot_dimension_numbers<[1], [0], [0], [1], [0, 0, 1, 1], [], []>, precision = #tpu.contract_precision<fp32>} : vector<4x8xf32>, vector<8x2xf32>, vector<4x2xf32> -> vector<4x2xf32>
    %c0_60 = arith.constant 0 : index
    %c0_61 = arith.constant 0 : index
    %60 = vector.load %arg10[%c0_60, %c0_61] : memref<4x1xf32, #tpu.memory_space<vmem>>, vector<4x1xf32>
    %61 = vector.broadcast %60 : vector<4x1xf32> to vector<4x2xf32>
    %62 = arith.addf %59, %61 : vector<4x2xf32>
    %cst_62 = arith.constant 0.000000e+00 : f32
    %63 = vector.broadcast %cst_62 : f32 to vector<4x2xf32>
    %64 = arith.maximumf %62, %63 : vector<4x2xf32>
    %c0_63 = arith.constant 0 : index
    %c0_64 = arith.constant 0 : index
    %65 = vector.load %arg11[%c0_63, %c0_64] : memref<8x4xf32, #tpu.memory_space<vmem>>, vector<8x4xf32>
    %cst_65 = arith.constant dense<0.000000e+00> : vector<8x2xf32>
    %66 = tpu.matmul %65, %64, %cst_65 {dimension_numbers = #tpu.dot_dimension_numbers<[1], [0], [0], [1], [0, 0, 1, 1], [], []>, precision = #tpu.contract_precision<fp32>} : vector<8x4xf32>, vector<4x2xf32>, vector<8x2xf32> -> vector<8x2xf32>
    %c0_66 = arith.constant 0 : index
    %c0_67 = arith.constant 0 : index
    %67 = vector.load %arg12[%c0_66, %c0_67] : memref<8x1xf32, #tpu.memory_space<vmem>>, vector<8x1xf32>
    %68 = vector.broadcast %67 : vector<8x1xf32> to vector<8x2xf32>
    %69 = arith.addf %66, %68 : vector<8x2xf32>
    %70 = arith.negf %69 : vector<8x2xf32>
    %71 = math.exp %70 : vector<8x2xf32>
    %cst_68 = arith.constant 1.000000e+00 : f32
    %72 = vector.broadcast %cst_68 : f32 to vector<8x2xf32>
    %73 = arith.addf %72, %71 : vector<8x2xf32>
    %74 = arith.divf %72, %73 : vector<8x2xf32>
    %75 = arith.mulf %74, %57 : vector<8x2xf32>
    %c0_69 = arith.constant 0 : index
    %c0_70 = arith.constant 0 : index
    %76 = vector.load %arg4[%c0_69, %c0_70] : memref<2x512xf32, #tpu.memory_space<vmem>>, vector<2x512xf32>
    %cst_71 = arith.constant dense<0.000000e+00> : vector<8x512xf32>
    %77 = tpu.matmul %75, %76, %cst_71 {dimension_numbers = #tpu.dot_dimension_numbers<[1], [0], [0], [1], [0, 0, 1, 1], [], []>, precision = #tpu.contract_precision<fp32>} : vector<8x2xf32>, vector<2x512xf32>, vector<8x512xf32> -> vector<8x512xf32>
    %78 = arith.addf %0, %77 : vector<8x512xf32>
    %c0_72 = arith.constant 0 : index
    %c0_73 = arith.constant 0 : index
    %79 = vector.load %arg13[%c0_72, %c0_73] : memref<8x512xf32, #tpu.memory_space<vmem>>, vector<8x512xf32>
    tpu.vector_store %arg13[%c0_72, %c0_73], %78 {strides = array<i32>} : memref<8x512xf32, #tpu.memory_space<vmem>>, vector<8x512xf32>,
    return
  }
  func.func @transform_0(%arg0: i32) -> (i32, i32) {
    %c0_i32 = arith.constant 0 : i32
    %c0_i32_0 = arith.constant 0 : i32
    %c0_i32_1 = arith.constant 0 : i32
    return %c0_i32, %c0_i32_0 : i32, i32
  }
  func.func @transform_1(%arg0: i32) -> (i32, i32) {
    %c0_i32 = arith.constant 0 : i32
    %c0_i32_0 = arith.constant 0 : i32
    %c0_i32_1 = arith.constant 0 : i32
    return %c0_i32, %c0_i32_0 : i32, i32
  }
  func.func @transform_2(%arg0: i32) -> (i32, i32) {
    %c0_i32 = arith.constant 0 : i32
    %c0_i32_0 = arith.constant 0 : i32
    %c0_i32_1 = arith.constant 0 : i32
    return %c0_i32, %c0_i32_0 : i32, i32
  }
  func.func @transform_3(%arg0: i32) -> (i32, i32) {
    %c0_i32 = arith.constant 0 : i32
    %c0_i32_0 = arith.constant 0 : i32
    %c0_i32_1 = arith.constant 0 : i32
    return %c0_i32, %c0_i32_0 : i32, i32
  }
  func.func @transform_4(%arg0: i32) -> (i32, i32) {
    %c0_i32 = arith.constant 0 : i32
    %c0_i32_0 = arith.constant 0 : i32
    %c0_i32_1 = arith.constant 0 : i32
    return %c0_i32, %c0_i32_0 : i32, i32
  }
  func.func @transform_5(%arg0: i32) -> (i32, i32) {
    %c0_i32 = arith.constant 0 : i32
    %c0_i32_0 = arith.constant 0 : i32
    %c0_i32_1 = arith.constant 0 : i32
    return %c0_i32, %c0_i32_0 : i32, i32
  }
  func.func @transform_6(%arg0: i32) -> (i32, i32) {
    %c0_i32 = arith.constant 0 : i32
    %c0_i32_0 = arith.constant 0 : i32
    %c0_i32_1 = arith.constant 0 : i32
    return %c0_i32, %c0_i32_0 : i32, i32
  }
  func.func @transform_7(%arg0: i32) -> (i32, i32) {
    %c0_i32 = arith.constant 0 : i32
    %c0_i32_0 = arith.constant 0 : i32
    %c0_i32_1 = arith.constant 0 : i32
    return %c0_i32, %c0_i32_0 : i32, i32
  }
  func.func @transform_8(%arg0: i32) -> (i32, i32) {
    %c0_i32 = arith.constant 0 : i32
    %c0_i32_0 = arith.constant 0 : i32
    %c0_i32_1 = arith.constant 0 : i32
    return %c0_i32, %c0_i32_0 : i32, i32
  }
  func.func @transform_9(%arg0: i32) -> (i32, i32) {
    %c0_i32 = arith.constant 0 : i32
    %c0_i32_0 = arith.constant 0 : i32
    %c0_i32_1 = arith.constant 0 : i32
    return %c0_i32, %c0_i32_0 : i32, i32
  }
  func.func @transform_10(%arg0: i32) -> (i32, i32) {
    %c0_i32 = arith.constant 0 : i32
    %c0_i32_0 = arith.constant 0 : i32
    %c0_i32_1 = arith.constant 0 : i32
    return %c0_i32, %c0_i32_0 : i32, i32
  }
  func.func @transform_11(%arg0: i32) -> (i32, i32) {
    %c0_i32 = arith.constant 0 : i32
    %c0_i32_0 = arith.constant 0 : i32
    %c0_i32_1 = arith.constant 0 : i32
    return %c0_i32, %c0_i32_0 : i32, i32
  }
  func.func @transform_12(%arg0: i32) -> (i32, i32) {
    %c0_i32 = arith.constant 0 : i32
    %c0_i32_0 = arith.constant 0 : i32
    %c0_i32_1 = arith.constant 0 : i32
    return %c0_i32, %c0_i32_0 : i32, i32
  }
}

</mosaic_0001>

<bundles_post_ra>
// kernel: tpu_custom_call.1
= control target key start
LH: loop header
LB: loop body
LE: loop exit
PB: predicated region body
PF: predicated region fallthrough
CT: control target
= control target key end

     0   :  { %s7530_s0 = inlined_call_operand.vmem [shape: f32[8,512], index: 0, kind: input, shape index: {}]   ;;  %s7531_s1 = inlined_call_operand.vmem [shape: f32[1,512], index: 1, kind: input, shape index: {}]   ;;  %s7532_s2 = inlined_call_operand.vmem [shape: f32[512,2], index: 2, kind: input, shape index: {}]   ;;  %s7533_s3 = inlined_call_operand.vmem [shape: f32[2,512], index: 3, kind: input, shape index: {}]   ;;  %s7534_s4 = inlined_call_operand.vmem [shape: bf16[8,72], index: 4, kind: input, shape index: {}]   ;;  %s7535_s5 = inlined_call_operand.vmem [shape: f32[8,1], index: 5, kind: input, shape index: {}]   ;;  %s7536_s6 = inlined_call_operand.vmem [shape: bf16[8,72], index: 6, kind: input, shape index: {}]   ;;  %s7537_s7 = inlined_call_operand.vmem [shape: f32[8,1], index: 7, kind: input, shape index: {}]   ;;  %s7538_s8 = inlined_call_operand.vmem [shape: f32[4,8], index: 8, kind: input, shape index: {}]   ;;  %s7539_s9 = inlined_call_operand.vmem [shape: f32[4,1], index: 9, kind: input, shape index: {}]   ;;  %s7540_s10 = inlined_call_operand.vmem [shape: f32[8,4], index: 10, kind: input, shape index: {}]   ;;  %s7541_s11 = inlined_call_operand.vmem [shape: f32[8,1], index: 11, kind: input, shape index: {}]   ;;  %s7542_s12 = inlined_call_operand.hbm [shape: f32[8,512], index: 12, kind: output, shape index: {}]  }
   0x1   :  { %v5558_v0 = vld [vmem:[%s7530_s0 + $0x10] sm:$0xff]  ;;  %v5563_v1 = vld [vmem:[%s7530_s0 + $0x18] sm:$0xff]  ;;  %v5568_v2 = vld [vmem:[%s7530_s0] sm:$0xff] }
   0x2   :  { %v5332_v3 = vpack.i.bf16 %v5563_v1, %v5558_v0  ;;  %v5575_v4 = vld [vmem:[%s7530_s0 + $0x8] sm:$0xff] }
   0x3   :  { %17 = vsyncpa [#allocation4], 0  ;;  %v5322_v5 = vpack.i.bf16 %v5575_v4, %v5568_v2  ;;  %s5477_s29 = smov 17   ;;  %s5478_s30 = smov 16   ;;  %v5367_v6 = vpack.i.bf16 %v5563_v1, %v5568_v2  ;;  %v5362_v7 = vpack.i.bf16 %v5558_v0, %v5575_v4  ;;  %v5484_v8 = vmov 0   ;;  %v247_v9 = vld [vmem:[%s7535_s5] sm:$0xff] }
   0x4   :  { %5333 = vrot.lane.b32.xlu1 %v5332_v3, %s5477_s29  ;;  %s5479_s13 = smov 1   ;;  %s5480_s14 = smov 15   ;;  %302 = vmatprep.mubr.bf16.mxu0 %v5484_v8  ;;  %v56_v10 = vlaneseq  ;;  %vm257_vm8 = vcmask 1043456   ;;  %vm253_vm9 = vcmask 588800   ;;  %vm5487_vm10 = vmmov 0  }
   0x5   :  { %5323 = vrot.lane.b32.xlu0 %v5322_v5, %s5477_s29  ;;  %s5481_s15 = smov 127   ;;  %s5482_s16 = smov 112   ;;  %343 = vmatprep.mubr.bf16.mxu1 %v5484_v8  ;;  %vm2468_vm11 = vcmask 64512   ;;  %vm2926_vm12 = vcmask 31744   ;;  %vm3409_vm13 = vcmask 1041408   ;;  %vm3405_vm14 = vcmask 15360  }
   0x6   :  { %s5483_s17 = smov 113   ;;  %5402 = vset.pattern.permute.xlu0 %v5484_v8  ;;  %5443 = vset.pattern.permute.xlu1 %v5484_v8  ;;  %s5485_s18 = smov 111   ;;  %v5607_v11 = vand.u32 127, %v56_v10 }
   0x8   :  { %5338 = vrot.lane.b32.xlu1 %v5332_v3, %s5478_s30  ;;  %vm58_vm0 = vcmp.lt.s32.totalorder %v5607_v11, 17  ;;  %vm75_vm1 = vcmp.lt.s32.totalorder %v5607_v11, 16  ;;  %vm92_vm2 = vcmp.lt.s32.totalorder %v5607_v11, 15  ;;  %vm109_vm3 = vcmp.lt.s32.totalorder %v5607_v11, 1 }
   0x9   :  { %5328 = vrot.lane.b32.xlu0 %v5322_v5, %s5478_s30  ;;  %vm130_vm4 = vcmp.lt.s32.totalorder %v5607_v11, 127  ;;  %vm147_vm5 = vcmp.lt.s32.totalorder %v5607_v11, 113  ;;  %vm164_vm6 = vcmp.lt.s32.totalorder %v5607_v11, 112  ;;  %vm181_vm7 = vcmp.lt.s32.totalorder %v5607_v11, 111  ;;  %v6227_v11 = vld [vmem:[%s7532_s2 + $0xd8] sm:$0xff] }
   0xc   :  { %5348 = vrot.lane.b32.xlu1 %v5322_v5, %s5479_s13 }
   0xd   :  { %5343 = vrot.lane.b32.xlu0 %v5322_v5, %s5480_s14 }
  0x10   :  { %5358 = vrot.lane.b32.xlu1 %v5332_v3, %s5479_s13 }
  0x11   :  { %5353 = vrot.lane.b32.xlu0 %v5332_v3, %s5480_s14 }
  0x14   :  { %5368 = vrot.lane.b32.xlu1 %v5367_v6, %s5481_s15 }
  0x15   :  { %5363 = vrot.lane.b32.xlu0 %v5362_v7, %s5481_s15 }
  0x18   :  { %5378 = vrot.lane.b32.xlu1 %v5362_v7, %s5482_s16 }
  0x19   :  { %5373 = vrot.lane.b32.xlu0 %v5362_v7, %s5483_s17 }
  0x1c   :  { %5388 = vrot.lane.b32.xlu1 %v5367_v6, %s5482_s16 }
  0x1d   :  { %5383 = vrot.lane.b32.xlu0 %v5367_v6, %s5483_s17 }
  0x20   :  { %5398 = vrot.lane.b32.xlu1 %v5332_v3, %s5485_s18 }
  0x21   :  { %5393 = vrot.lane.b32.xlu0 %v5322_v5, %s5485_s18 }
  0x25   :  { %250 = vperm.xlu0 %5402, %v247_v9  }
  0x76   :  { %v5334_v12 = vpop.permute.xlu1 %5333 }
  0x77   :  { %v5324_v13 = vpop.permute.xlu0 %5323  ;;  %v5336_v14 = vunpack.i.h.bf16 %v5334_v12  ;;  %v5335_v15 = vunpack.i.l.bf16 %v5334_v12 }
  0x78   :  { %v5326_v16 = vunpack.i.h.bf16 %v5324_v13  ;;  %v5325_v17 = vunpack.i.l.bf16 %v5324_v13 }
  0x79   :  { %v59_v24 = vsel %vm58_vm0, %v5335_v15, %v5336_v14 }
  0x7a   :  { %v5339_v18 = vpop.permute.xlu1 %5338  ;;  %v61_v25 = vsel %vm58_vm0, %v5325_v17, %v5326_v16  ;;  %v62_v27 = vsel %vm58_vm0, %v5336_v14, %v5325_v17  ;;  %v60_v28 = vsel %vm58_vm0, %v5326_v16, %v5335_v15 }
  0x7b   :  { %v5341_v19 = vunpack.i.h.bf16 %v5339_v18  ;;  %v5340_v20 = vunpack.i.l.bf16 %v5339_v18  ;;  %v5329_v21 = vpop.permute.xlu0 %5328 }
  0x7c   :  { %v5331_v22 = vunpack.i.h.bf16 %v5329_v21  ;;  %v5330_v23 = vunpack.i.l.bf16 %v5329_v21 }
  0x7d   :  { %v76_v26 = vsel %vm75_vm1, %v5340_v20, %v5341_v19 }
  0x7e   :  { %v5349_v29 = vpop.permute.xlu1 %5348  ;;  %v78_v30 = vsel %vm75_vm1, %v5330_v23, %v5331_v22  ;;  %v230_v31 = vpack.c.bf16 %v76_v26, %v59_v24  ;;  %v79_v32 = vsel %vm75_vm1, %v5341_v19, %v5330_v23  ;;  %v77_v33 = vsel %vm75_vm1, %v5331_v22, %v5340_v20 }
  0x7f   :  { %v5351_v34 = vunpack.i.h.bf16 %v5349_v29  ;;  %v5350_v35 = vunpack.i.l.bf16 %v5349_v29  ;;  %v5344_v36 = vpop.permute.xlu0 %5343  ;;  %v228_v37 = vpack.c.bf16 %v78_v30, %v61_v25  ;;  %v227_v38 = vpack.c.bf16 %v79_v32, %v62_v27 }
  0x80   :  { %v5346_v39 = vunpack.i.h.bf16 %v5344_v36  ;;  %v5345_v40 = vunpack.i.l.bf16 %v5344_v36  ;;  %311 = vmatprep.subr.bf16.mxu1 %v230_v31  ;;  %v229_v41 = vpack.c.bf16 %v77_v33, %v60_v28 }
  0x81   :  { %270 = vmatprep.subr.bf16.mxu0 %v228_v37  ;;  %v112_v42 = vsel %vm109_vm3, %v5350_v35, %v5351_v34 }
  0x82   :  { %271 = vmatpush1.bf16.msra.mxu0 %v227_v38  ;;  %312 = vmatpush1.bf16.msra.mxu1 %v229_v41  ;;  %v5359_v43 = vpop.permute.xlu1 %5358  ;;  %v95_v44 = vsel %vm92_vm2, %v5345_v40, %v5346_v39 }
  0x83   :  { %v5361_v45 = vunpack.i.h.bf16 %v5359_v43  ;;  %v5360_v46 = vunpack.i.l.bf16 %v5359_v43  ;;  %v5354_v47 = vpop.permute.xlu0 %5353  ;;  %v232_v48 = vpack.c.bf16 %v112_v42, %v95_v44 }
  0x84   :  { %v5356_v49 = vunpack.i.h.bf16 %v5354_v47  ;;  %v5355_v50 = vunpack.i.l.bf16 %v5354_v47 }
  0x85   :  { %272 = vmatprep.subr.bf16.mxu0 %v232_v48  ;;  %v113_v51 = vsel %vm109_vm3, %v5361_v45, %v5350_v35  ;;  %v110_v52 = vsel %vm109_vm3, %v5360_v46, %v5361_v45  ;;  %v111_v53 = vsel %vm109_vm3, %v5351_v34, %v5360_v46 }
  0x86   :  { %v5369_v54 = vpop.permute.xlu1 %5368  ;;  %v96_v55 = vsel %vm92_vm2, %v5356_v49, %v5345_v40  ;;  %v93_v56 = vsel %vm92_vm2, %v5355_v50, %v5356_v49  ;;  %v94_v57 = vsel %vm92_vm2, %v5346_v39, %v5355_v50 }
  0x87   :  { %v5371_v58 = vunpack.i.h.bf16 %v5369_v54  ;;  %v5370_v59 = vunpack.i.l.bf16 %v5369_v54  ;;  %v5364_v60 = vpop.permute.xlu0 %5363  ;;  %v231_v61 = vpack.c.bf16 %v113_v51, %v96_v55  ;;  %v234_v62 = vpack.c.bf16 %v110_v52, %v93_v56 }
  0x88   :  { %v5366_v63 = vunpack.i.h.bf16 %v5364_v60  ;;  %v5365_v3 = vunpack.i.l.bf16 %v5364_v60  ;;  %v233_v5 = vpack.c.bf16 %v111_v53, %v94_v57  ;;  %v190_v53 = vld [vmem:[%s7534_s4] sm:$0xf]  ;;  %v5697_v54 = vshrl.u32 %v56_v10, 7 }
  0x89   :  { %273 = vmatpush1.bf16.msra.mxu0 %v231_v61  ;;  %313 = vmatprep.subr.bf16.mxu1 %v234_v62  ;;  %v134_v6 = vsel %vm130_vm4, %v5371_v58, %v5370_v59  ;;  %v47_v57 = vld [vmem:[%s7531_s1] sm:$0xf] }
  0x8a   :  { %314 = vmatpush1.bf16.msra.mxu1 %v233_v5  ;;  %v5379_v7 = vpop.permute.xlu1 %5378  ;;  %v132_v9 = vsel %vm130_vm4, %v5365_v3, %v5366_v63  ;;  %v238_v12 = vpack.c.bf16 %v134_v6, %v5563_v1  ;;  %v133_v13 = vsel %vm130_vm4, %v5370_v59, %v5365_v3  ;;  %v131_v14 = vsel %vm130_vm4, %v5366_v63, %v5371_v58 }
  0x8b   :  { %v5381_v15 = vunpack.i.h.bf16 %v5379_v7  ;;  %v5380_v16 = vunpack.i.l.bf16 %v5379_v7  ;;  %v5374_v17 = vpop.permute.xlu0 %5373  ;;  %v236_v18 = vpack.c.bf16 %v132_v9, %v5575_v4  ;;  %v235_v19 = vpack.c.bf16 %v133_v13, %v5568_v2  ;;  %7672 = vst [vmem:[#allocation6_spill] sm:$0xff] %v5697_v54 }
  0x8c   :  { %v5376_v20 = vunpack.i.h.bf16 %v5374_v17  ;;  %v5375_v21 = vunpack.i.l.bf16 %v5374_v17  ;;  %315 = vmatprep.subr.bf16.mxu1 %v238_v12  ;;  %v237_v22 = vpack.c.bf16 %v131_v14, %v5558_v0  ;;  %v359_v55 = vsub.s32 0, %v5697_v54 }
  0x8d   :  { %274 = vmatprep.subr.bf16.mxu0 %v236_v18  ;;  %v166_v1 = vsel %vm164_vm6, %v5380_v16, %v5381_v15  ;;  %v363_v58 = vsub.s32 1, %v5697_v54 }
  0x8e   :  { %275 = vmatpush1.bf16.msra.mxu0 %v235_v19  ;;  %316 = vmatpush1.bf16.msra.mxu1 %v237_v22  ;;  %v5389_v23 = vpop.permute.xlu1 %5388  ;;  %v149_v24 = vsel %vm147_vm5, %v5375_v21, %v5376_v20  ;;  %v360_v62 = vrot.slane %v47_v57, %v359_v55  ;;  %v367_v22 = vsub.s32 2, %v5697_v54 }
  0x8f   :  { %v5391_v25 = vunpack.i.h.bf16 %v5389_v23  ;;  %v5390_v26 = vunpack.i.l.bf16 %v5389_v23  ;;  %v5384_v4 = vpop.permute.xlu0 %5383  ;;  %v240_v27 = vpack.c.bf16 %v166_v1, %v149_v24  ;;  %v364_v10 = vrot.slane %v47_v57, %v363_v58  ;;  %v5838_v58 = vld [vmem:[%s7532_s2 + $0x10] sm:$0xff] }
  0x90   :  { %v5386_v2 = vunpack.i.h.bf16 %v5384_v4  ;;  %v5385_v28 = vunpack.i.l.bf16 %v5384_v4  ;;  %v368_v24 = vrot.slane %v47_v57, %v367_v22  ;;  %v731_v4 = vld [vmem:[%s7537_s7] sm:$0xff] }
  0x91   :  { %276 = vmatprep.subr.bf16.mxu0 %v240_v27  ;;  %v167_v0 = vsel %vm164_vm6, %v5390_v26, %v5380_v16  ;;  %v168_v29 = vsel %vm164_vm6, %v5391_v25, %v5390_v26  ;;  %v165_v30 = vsel %vm164_vm6, %v5381_v15, %v5391_v25  ;;  %v2920_v27 = vld [vmem:[%s7541_s11] sm:$0xff] }
  0x92   :  { %v5399_v31 = vpop.permute.xlu1 %5398  ;;  %v150_v32 = vsel %vm147_vm5, %v5385_v28, %v5375_v21  ;;  %v151_v33 = vsel %vm147_vm5, %v5386_v2, %v5385_v28  ;;  %v148_v34 = vsel %vm147_vm5, %v5376_v20, %v5386_v2 }
  0x93   :  { %v5401_v35 = vunpack.i.h.bf16 %v5399_v31  ;;  %v5400_v36 = vunpack.i.l.bf16 %v5399_v31  ;;  %v5394_v37 = vpop.permute.xlu0 %5393  ;;  %v239_v38 = vpack.c.bf16 %v167_v0, %v150_v32  ;;  %v242_v39 = vpack.c.bf16 %v168_v29, %v151_v33 }
  0x94   :  { %v5396_v40 = vunpack.i.h.bf16 %v5394_v37  ;;  %v5395_v41 = vunpack.i.l.bf16 %v5394_v37  ;;  %v241_v42 = vpack.c.bf16 %v165_v30, %v148_v34  ;;  %v5788_v37 = vld [vmem:[%s7532_s2 + $0x88] sm:$0xff] }
  0x95   :  { %277 = vmatpush1.bf16.msra.mxu0 %v239_v38  ;;  %317 = vmatprep.subr.bf16.mxu1 %v242_v39  ;;  %v182_v43 = vsel %vm181_vm7, %v5400_v36, %v5401_v35 }
  0x96   :  { %v183_v44 = vsel %vm181_vm7, %v5396_v40, %v5400_v36  ;;  %v185_v45 = vsel %vm181_vm7, %v5401_v35, %v5395_v41  ;;  %318 = vmatpush1.bf16.msra.mxu1 %v241_v42  ;;  %v184_v46 = vsel %vm181_vm7, %v5395_v41, %v5396_v40  ;;  %v245_v47 = vpack.c.bf16 %v182_v43, %v182_v43  ;;  %v5783_v36 = vld [vmem:[%s7532_s2 + $0x80] sm:$0xff] }
  0x97   :  { %v244_v48 = vpack.c.bf16 %v183_v44, %v183_v44  ;;  %v246_v49 = vpack.c.bf16 %v185_v45, %v185_v45  ;;  %v243_v50 = vpack.c.bf16 %v184_v46, %v184_v46  ;;  %v5801_v40 = vld [vmem:[%s7532_s2] sm:$0xff]  ;;  %v786_v44 = vand.u32 4294901760, %v5783_v36  ;;  %v5812_v46 = vld [vmem:[%s7532_s2 + $0x8] sm:$0xff] }
  0x98   :  { %v265_v51 = vsel %vm257_vm8, %v245_v47, 0  ;;  %v789_v45 = vand.u32 4294901760, %v5788_v37  ;;  %v5817_v47 = vld [vmem:[%s7532_s2 + $0x90] sm:$0xff] }
  0x99   :  { %4370 = vmatprep.subr.msk.bf16.mxu0 %vm257_vm8, %v244_v48  ;;  %4372 = vmatprep.subr.msk.bf16.mxu1 %vm257_vm8, %v246_v49  ;;  %v259_v52 = vsel %vm257_vm8, %v243_v50, 0  ;;  %v5828_v50 = vld [vmem:[%s7532_s2 + $0x98] sm:$0xff] }
  0x9a   :  { %279 = vmatpush1.bf16.msra.mxu0 %v259_v52  ;;  %320 = vmatpush1.bf16.msra.mxu1 %v265_v51  ;;  %v7558_v52 = vand.u32 4294901760, %v5801_v40 }
  0x9d   :  { %4371 = vmatmul.mubr.msk.bf16.vlgmr.msra.gmra.mrb[0].mxu0 %vm253_vm9, %v190_v53  ;;  %4373 = vmatmul.mubr.msk.bf16.vlgmr.msra.gmra.mrb[0].mxu1 %vm253_vm9, %v190_v53 }
  0x9e   :  { %617 = vmatprep.mubr.bf16.mxu0 %v5484_v8  ;;  %658 = vmatprep.mubr.bf16.mxu1 %v5484_v8  ;;  %v371_v8 = vsub.s32 3, %v5697_v54 }
  0xa0   :  { %v372_v18 = vrot.slane %v47_v57, %v371_v8  ;;  %v7556_v57 = vand.u32 4294901760, %v5817_v47 }
  0xa4   :  { %v251_v56 = vpop.permute.xlu0 %250 }
 0x170   :  { %v304_v59 = vpop.f32.mrb[0].mxu0  ;;  %v345_v60 = vpop.f32.mrb[0].mxu1 }
 0x171   :  { %v305_v61 = vadd.f32 %v304_v59, %v251_v56  ;;  %v306_v63 = vpop.f32.mrb[1].mxu0  ;;  %v347_v3 = vpop.f32.mrb[1].mxu1  ;;  %v346_v21 = vadd.f32 %v345_v60, %v251_v56 }
 0x172   :  { %v307_v5 = vadd.f32 %v306_v63, %v251_v56  ;;  %v348_v6 = vadd.f32 %v347_v3, %v251_v56  ;;  %v308_v7 = vpop.f32.mrb[2].mxu0  ;;  %v349_v9 = vpop.f32.mrb[2].mxu1  ;;  %v7557_v56 = vand.u32 4294901760, %v5812_v46  ;;  %v7554_v63 = vand.u32 4294901760, %v5828_v50 }
 0x173   :  { %v352_v12 = vmax.f32 %v305_v61, 0.0  ;;  %v309_v13 = vpop.f32.mrb[3].mxu0  ;;  %v350_v14 = vpop.f32.mrb[3].mxu1  ;;  %v354_v23 = vmax.f32 %v346_v21, 0.0  ;;  %v5847_v61 = vsub.f32 %v5783_v36, %v786_v44  ;;  %v5867_v7 = vsub.f32 %v5801_v40, %v7558_v52  ;;  %v6042_v36 = vld [vmem:[%s7532_s2 + $0xb0] sm:$0xff] }
 0x174   :  { %v353_v15 = vmax.f32 %v307_v5, 0.0  ;;  %v355_v17 = vmax.f32 %v348_v6, 0.0  ;;  %v5862_v6 = vld [vmem:[%s7532_s2 + $0x18] sm:$0xff]  ;;  %v7548_v9 = vand.u32 4294901760, %v5838_v58  ;;  %v5881_v14 = vsub.f32 %v5812_v46, %v7557_v56 }
 0x175   :  { %v5705_v16 = vmul.f32 %v360_v62, %v352_v12  ;;  %v5723_v25 = vmul.f32 %v368_v24, %v354_v23  ;;  %v5852_v62 = vsub.f32 %v5788_v37, %v789_v45  ;;  %v5899_v22 = vsub.f32 %v5828_v50, %v7554_v63 }
 0x176   :  { %v5707_v19 = vmul.f32 %v364_v10, %v353_v15  ;;  %v5716_v1 = vmul.f32 %v372_v18, %v355_v17  ;;  %v5886_v15 = vsub.f32 %v5817_v47, %v7556_v57  ;;  %v7547_v23 = vand.u32 4294901760, %v5862_v6 }
 0x177   :  { %465 = vrot.lane.b32.xlu0 %v5705_v16, %s5483_s17  ;;  %449 = vrot.lane.b32.xlu1 %v5705_v16, %s5481_s15 }
 0x178   :  { %v5403_v20 = vpack.i.bf16 %v5707_v19, %v5705_v16  ;;  %v5423_v26 = vpack.i.bf16 %v5723_v25, %v5707_v19 }
 0x17b   :  { %387 = vrot.lane.b32.xlu0 %v5716_v1, %s5477_s29  ;;  %5404 = vrot.lane.b32.xlu1 %v5403_v20, %s5477_s29 }
 0x17f   :  { %5414 = vrot.lane.b32.xlu0 %v5403_v20, %s5480_s14  ;;  %5409 = vrot.lane.b32.xlu1 %v5403_v20, %s5478_s30 }
 0x183   :  { %419 = vrot.lane.b32.xlu0 %v5716_v1, %s5480_s14  ;;  %403 = vrot.lane.b32.xlu1 %v5716_v1, %s5478_s30 }
 0x187   :  { %5424 = vrot.lane.b32.xlu0 %v5423_v26, %s5481_s15  ;;  %5419 = vrot.lane.b32.xlu1 %v5403_v20, %s5479_s13 }
 0x18b   :  { %5429 = vrot.lane.b32.xlu0 %v5423_v26, %s5483_s17  ;;  %435 = vrot.lane.b32.xlu1 %v5716_v1, %s5479_s13 }
 0x18f   :  { %5439 = vrot.lane.b32.xlu0 %v5403_v20, %s5485_s18  ;;  %481 = vrot.lane.b32.xlu1 %v5705_v16, %s5482_s16 }
 0x193   :  { %385 = vrot.lane.b32.xlu0 %v5723_v25, %s5477_s29  ;;  %5434 = vrot.lane.b32.xlu1 %v5423_v26, %s5482_s16 }
 0x197   :  { %417 = vrot.lane.b32.xlu0 %v5723_v25, %s5480_s14  ;;  %501 = vrot.lane.b32.xlu1 %v5723_v25, %s5485_s18 }
 0x19b   :  { %455 = vrot.lane.b32.xlu0 %v5716_v1, %s5481_s15  ;;  %401 = vrot.lane.b32.xlu1 %v5723_v25, %s5478_s30 }
 0x19f   :  { %487 = vrot.lane.b32.xlu0 %v5716_v1, %s5482_s16  ;;  %433 = vrot.lane.b32.xlu1 %v5723_v25, %s5479_s13 }
 0x1a3   :  { %734 = vperm.xlu0 %5402, %v731_v4   ;;  %471 = vrot.lane.b32.xlu1 %v5716_v1, %s5483_s17  ;;  %v7544_v4 = vand.u32 4294901760, %v5847_v61 }
 0x1a7   :  { %2923 = vperm.xlu0 %5402, %v2920_v27   ;;  %503 = vrot.lane.b32.xlu1 %v5716_v1, %s5485_s18  ;;  %v7543_v27 = vand.u32 4294901760, %v5852_v62 }
 0x1e9   :  { %v5764_v2 = vpop.permute.xlu0 %465  ;;  %v5766_v28 = vpop.permute.xlu1 %449 }
 0x1ed   :  { %v5768_v0 = vpop.permute.xlu0 %387  ;;  %v5770_v29 = vpop.permute.xlu1 %5404 }
 0x1ee   :  { %v7563_v30 = vunpack.i.h.bf16 %v5770_v29  ;;  %v5406_v31 = vunpack.i.l.bf16 %v5770_v29 }
 0x1f0   :  { %v391_v38 = vsel %vm58_vm0, %v5406_v31, %v7563_v30  ;;  %v392_v48 = vsel %vm58_vm0, %v5768_v0, %v5406_v31 }
 0x1f1   :  { %v5774_v32 = vpop.permute.xlu0 %5414  ;;  %v5776_v33 = vpop.permute.xlu1 %5409 }
 0x1f2   :  { %v7560_v34 = vunpack.i.h.bf16 %v5776_v33  ;;  %v5411_v35 = vunpack.i.l.bf16 %v5776_v33  ;;  %v7552_v53 = vunpack.i.h.bf16 %v5774_v32  ;;  %v5416_v55 = vunpack.i.l.bf16 %v5774_v32 }
 0x1f4   :  { %v407_v39 = vsel %vm75_vm1, %v5411_v35, %v7560_v34  ;;  %v423_v12 = vsel %vm92_vm2, %v5416_v55, %v7552_v53 }
 0x1f5   :  { %v5803_v41 = vpop.permute.xlu0 %419  ;;  %v5805_v42 = vpop.permute.xlu1 %403  ;;  %v551_v43 = vpack.c.bf16 %v407_v39, %v391_v38  ;;  %v5914_v38 = vsub.f32 %v5838_v58, %v7548_v9 }
 0x1f6   :  { %v408_v49 = vsel %vm75_vm1, %v5805_v42, %v5411_v35  ;;  %v424_v24 = vsel %vm92_vm2, %v5803_v41, %v5416_v55  ;;  %v7545_v35 = vand.u32 4294901760, %v5867_v7  ;;  %v7550_v55 = vand.u32 4294901760, %v5886_v15 }
 0x1f7   :  { %v550_v51 = vpack.c.bf16 %v408_v49, %v392_v48  ;;  %585 = vmatprep.subr.bf16.mxu0 %v551_v43 }
 0x1f9   :  { %v5840_v59 = vpop.permute.xlu0 %5424  ;;  %v5842_v60 = vpop.permute.xlu1 %5419  ;;  %586 = vmatpush1.bf16.msra.mxu0 %v550_v51  ;;  %v7549_v51 = vand.u32 4294901760, %v5881_v14 }
 0x1fa   :  { %v7546_v3 = vunpack.i.h.bf16 %v5840_v59  ;;  %v5426_v8 = vunpack.i.l.bf16 %v5840_v59  ;;  %v7551_v5 = vunpack.i.h.bf16 %v5842_v60  ;;  %v5421_v10 = vunpack.i.l.bf16 %v5842_v60 }
 0x1fc   :  { %v439_v13 = vsel %vm109_vm3, %v5421_v10, %v7551_v5  ;;  %v458_v21 = vsel %vm130_vm4, %v5426_v8, %v7546_v3  ;;  %v459_v39 = vsel %vm130_vm4, %v5766_v28, %v5426_v8  ;;  %v5936_v8 = vsub.f32 %v5862_v6, %v7547_v23 }
 0x1fd   :  { %v5888_v17 = vpop.permute.xlu0 %5429  ;;  %v5890_v18 = vpop.permute.xlu1 %435  ;;  %v555_v20 = vpack.c.bf16 %v439_v13, %v423_v12  ;;  %v559_v43 = vpack.c.bf16 %v458_v21, %v5707_v19  ;;  %v965_v12 = vsub.f32 %v5847_v61, %v7544_v4  ;;  %v972_v19 = vsub.f32 %v5852_v62, %v7543_v27 }
 0x1fe   :  { %v440_v26 = vsel %vm109_vm3, %v5890_v18, %v5421_v10  ;;  %v7553_v10 = vand.u32 4294901760, %v5899_v22  ;;  %v558_v13 = vpack.c.bf16 %v459_v39, %v5705_v16  ;;  %v853_v21 = vsub.f32 %v5867_v7, %v7545_v35 }
 0x1ff   :  { %v554_v31 = vpack.c.bf16 %v440_v26, %v424_v24  ;;  %587 = vmatprep.subr.bf16.mxu0 %v555_v20  ;;  %v5431_v20 = vunpack.i.l.bf16 %v5888_v17  ;;  %v7555_v24 = vand.u32 4294901760, %v5914_v38  ;;  %v7559_v26 = vunpack.i.h.bf16 %v5888_v17 }
 0x200   :  { %v860_v16 = vsub.f32 %v5881_v14, %v7549_v51  ;;  %v5955_v39 = vsub.f32 %v5886_v15, %v7550_v55  ;;  %v5960_v35 = vsub.f32 %v5899_v22, %v7553_v10  ;;  %v966_v9 = vand.u32 4294901760, %v965_v12  ;;  %v5968_v51 = vld [vmem:[%s7532_s2 + $0xa0] sm:$0xff] }
 0x201   :  { %v5920_v48 = vpop.permute.xlu0 %5439  ;;  %v5922_v49 = vpop.permute.xlu1 %481  ;;  %588 = vmatpush1.bf16.msra.mxu0 %v554_v31  ;;  %v475_v55 = vsel %vm147_vm5, %v5764_v2, %v5431_v20  ;;  %v973_v5 = vand.u32 4294901760, %v972_v19  ;;  %v854_v53 = vand.u32 4294901760, %v853_v21  ;;  %v5976_v10 = vsub.f32 %v5914_v38, %v7555_v24  ;;  %v5996_v24 = vld [vmem:[%s7532_s2 + $0xa8] sm:$0xff] }
 0x202   :  { %589 = vmatprep.subr.bf16.mxu0 %v559_v43  ;;  %v5442_v31 = vunpack.i.h.bf16 %v5920_v48  ;;  %v7562_v43 = vunpack.i.l.bf16 %v5920_v48  ;;  %v474_v63 = vsel %vm147_vm5, %v5431_v20, %v7559_v26  ;;  %v861_v26 = vand.u32 4294901760, %v860_v16 }
 0x203   :  { %v7565_v34 = vand.u32 4294901760, %v5968_v51 }
 0x204   :  { %v507_v21 = vsel %vm181_vm7, %v7562_v43, %v5442_v31  ;;  %v6008_v43 = vld [vmem:[%s7532_s2 + $0x20] sm:$0xff] }
 0x205   :  { %v386_v27 = vpop.permute.xlu0 %385  ;;  %v5947_v4 = vpop.permute.xlu1 %5434  ;;  %590 = vmatpush1.bf16.msra.mxu0 %v558_v13  ;;  %v7564_v13 = vand.u32 4294901760, %v5936_v8  ;;  %v566_v16 = vpack.c.bf16 %v507_v21, %v507_v21 }
 0x206   :  { %v7561_v3 = vunpack.i.h.bf16 %v5947_v4  ;;  %v5436_v23 = vunpack.i.l.bf16 %v5947_v4  ;;  %v389_v37 = vsel %vm58_vm0, %v386_v27, %v5768_v0 }
 0x207   :  { %v874_v30 = vsub.f32 %v5936_v8, %v7564_v13 }
 0x208   :  { %v491_v12 = vsel %vm164_vm6, %v5922_v49, %v5436_v23  ;;  %v490_v19 = vsel %vm164_vm6, %v5436_v23, %v7561_v3  ;;  %v980_v3 = vand.u32 4294901760, %v5955_v39  ;;  %v868_v39 = vand.u32 4294901760, %v5976_v10 }
 0x209   :  { %v562_v57 = vpack.c.bf16 %v491_v12, %v475_v55  ;;  %v418_v56 = vpop.permute.xlu0 %417  ;;  %v5998_v52 = vpop.permute.xlu1 %501  ;;  %v563_v20 = vpack.c.bf16 %v490_v19, %v474_v63  ;;  %v6013_v55 = vld [vmem:[%s7532_s2 + $0x28] sm:$0xff]  ;;  %v987_v12 = vand.u32 4294901760, %v5960_v35  ;;  %v801_v19 = vand.u32 4294901760, %v5996_v24 }
 0x20a   :  { %v506_v23 = vsel %vm181_vm7, %v5442_v31, %v5998_v52  ;;  %v6017_v31 = vpack.c.bf16 %v973_v5, %v966_v9  ;;  %v6030_v35 = vpack.c.bf16 %v861_v26, %v854_v53  ;;  %v750_v5 = vand.u32 4294901760, %v6008_v43 }
 0x20b   :  { %v567_v63 = vpack.c.bf16 %v506_v23, %v506_v23  ;;  %591 = vmatprep.subr.bf16.mxu0 %v563_v20  ;;  %v6027_v23 = vpack.c.bf16 %v789_v45, %v786_v44  ;;  %v753_v9 = vand.u32 4294901760, %v6013_v55  ;;  %v7673_v44 = vunpack.i.h.bf16 %v5770_v29  ;;  %v6065_v29 = vld [vmem:[%s7536_s6] sm:$0xf] }
 0x20c   :  { %592 = vmatpush1.bf16.msra.mxu0 %v562_v57  ;;  %v6035_v57 = vsub.f32 %v5968_v51, %v7565_v34  ;;  %v7674_v10 = vunpack.i.h.bf16 %v5776_v33  ;;  %v574_v34 = vsel %vm257_vm8, %v566_v16, 0  ;;  %v6060_v0 = vsub.f32 %v5996_v24, %v801_v19 }
 0x20d   :  { %v402_v21 = vpop.permute.xlu1 %401  ;;  %4374 = vmatprep.subr.msk.bf16.mxu0 %vm257_vm8, %v567_v63  ;;  %v390_v45 = vsel %vm58_vm0, %v7673_v44, %v386_v27  ;;  %v456_v20 = vpop.permute.xlu0 %455  ;;  %v7675_v33 = vand.u32 4294901760, %v5801_v40  ;;  %v7676_v27 = vand.u32 4294901760, %v5812_v46  ;;  %v7678_v16 = vand.u32 4294901760, %v5828_v50 }
 0x20e   :  { %v405_v53 = vsel %vm75_vm1, %v402_v21, %v5805_v42  ;;  %v406_v26 = vsel %vm75_vm1, %v7674_v10, %v402_v21  ;;  %v875_v42 = vand.u32 4294901760, %v874_v30  ;;  %v804_v24 = vand.u32 4294901760, %v6042_v36 }
 0x20f   :  { %v552_v63 = vpack.c.bf16 %v406_v26, %v390_v45  ;;  %v553_v13 = vpack.c.bf16 %v405_v53, %v389_v37  ;;  %v6071_v21 = vpack.c.bf16 %v7676_v27, %v7675_v33  ;;  %v7677_v37 = vand.u32 4294901760, %v5817_v47 }
 0x210   :  { %594 = vmatpush1.bf16.msra.mxu0 %v574_v34  ;;  %v690_v34 = vld [vmem:[%s7532_s2 + $0xb8] sm:$0xff]  ;;  %v421_v30 = vsel %vm92_vm2, %v418_v56, %v5803_v41  ;;  %v7571_v46 = vand.u32 4294901760, %v6035_v57  ;;  %v6091_v47 = vsub.f32 %v6008_v43, %v750_v5  ;;  %v6096_v50 = vsub.f32 %v6013_v55, %v753_v9 }
 0x211   :  { %v6077_v44 = vpack.c.bf16 %v7678_v16, %v7677_v37  ;;  %626 = vmatprep.subr.bf16.mxu1 %v553_v13  ;;  %v434_v40 = vpop.permute.xlu1 %433  ;;  %4884 = vmatprep.subr.bf16.mxu0 %v6027_v23  ;;  %v7679_v45 = vunpack.i.h.bf16 %v5774_v32  ;;  %v460_v13 = vsel %vm130_vm4, %v456_v20, %v5766_v28  ;;  %v7680_v10 = vunpack.i.h.bf16 %v5842_v60  ;;  %v673_v32 = vld [vmem:[%s7532_s2 + $0x30] sm:$0xff] }
 0x212   :  { %v437_v53 = vsel %vm109_vm3, %v434_v40, %v5890_v18  ;;  %627 = vmatpush1.bf16.msra.mxu1 %v552_v63  ;;  %v7570_v28 = vand.u32 4294901760, %v6060_v0  ;;  %v807_v27 = vand.u32 4294901760, %v690_v34  ;;  %v6118_v37 = vpack.c.bf16 %v987_v12, %v980_v3  ;;  %v691_v3 = vld [vmem:[%s7532_s2 + $0xc0] sm:$0xff] }
 0x213   :  { %v422_v41 = vsel %vm92_vm2, %v7679_v45, %v418_v56  ;;  %v438_v26 = vsel %vm109_vm3, %v7680_v10, %v434_v40  ;;  %v557_v56 = vpack.c.bf16 %v437_v53, %v421_v30  ;;  %4375 = vmatmul.mubr.msk.bf16.vlgmr.msra.gmra.mrb[4].mxu0 %vm253_vm9, %v6065_v29  ;;  %v6120_v18 = vpack.c.bf16 %v875_v42, %v868_v39  ;;  %v674_v40 = vld [vmem:[%s7532_s2 + $0x38] sm:$0xff]  ;;  %v692_v53 = vld [vmem:[%s7532_s2 + $0xc8] sm:$0xff] }
 0x214   :  { %v556_v33 = vpack.c.bf16 %v438_v26, %v422_v41  ;;  %4886 = vmatpush3.bf16.msra.mxu0 %v6071_v21  ;;  %v6124_v60 = vsub.f32 %v6042_v36, %v804_v24  ;;  %v7681_v63 = vand.u32 4294901760, %v5838_v58  ;;  %v7682_v16 = vand.u32 4294901760, %v5862_v6  ;;  %v488_v58 = vpop.permute.xlu0 %487 }
 0x215   :  { %v7683_v12 = vunpack.i.h.bf16 %v5840_v59  ;;  %v561_v36 = vpack.c.bf16 %v460_v13, %v5716_v1  ;;  %v472_v42 = vpop.permute.xlu1 %471  ;;  %628 = vmatprep.subr.bf16.mxu1 %v557_v56  ;;  %4888 = vmatprep.subr.bf16.mxu0 %v6077_v44  ;;  %v756_v6 = vand.u32 4294901760, %v673_v32  ;;  %v7684_v45 = vand.u32 4294901760, %v5968_v51 }
 0x216   :  { %v6130_v30 = vpack.c.bf16 %v7682_v16, %v7681_v63  ;;  %v476_v59 = vsel %vm147_vm5, %v472_v42, %v5764_v2  ;;  %629 = vmatpush1.bf16.msra.mxu1 %v556_v33  ;;  %v6157_v1 = vsub.f32 %v6035_v57, %v7571_v46  ;;  %v7568_v51 = vand.u32 4294901760, %v6096_v50 }
 0x217   :  { %v457_v39 = vsel %vm130_vm4, %v7683_v12, %v456_v20  ;;  %v6146_v41 = vpack.c.bf16 %v801_v19, %v7684_v45  ;;  %v7569_v20 = vand.u32 4294901760, %v6091_v47  ;;  %630 = vmatprep.subr.bf16.mxu1 %v561_v36  ;;  %v6164_v19 = vsub.f32 %v6060_v0, %v7570_v28 }
 0x218   :  { %v6166_v13 = vsub.f32 %v690_v34, %v807_v27  ;;  %v759_v10 = vand.u32 4294901760, %v674_v40  ;;  %v810_v2 = vand.u32 4294901760, %v691_v3  ;;  %v560_v26 = vpack.c.bf16 %v457_v39, %v5723_v25  ;;  %4890 = vmatpush3.bf16.msra.mxu0 %v6130_v30  ;;  %v675_v34 = vld [vmem:[%s7532_s2 + $0x40] sm:$0xff] }
 0x219   :  { %v492_v33 = vsel %vm164_vm6, %v488_v58, %v5922_v49  ;;  %v813_v56 = vand.u32 4294901760, %v692_v53  ;;  %v6177_v63 = vpack.c.bf16 %v753_v9, %v750_v5  ;;  %v7685_v16 = vunpack.i.h.bf16 %v5888_v17  ;;  %v504_v49 = vpop.permute.xlu1 %503  ;;  %4892 = vmatprep.subr.bf16.mxu0 %v6146_v41 }
 0x21a   :  { %v565_v12 = vpack.c.bf16 %v492_v33, %v476_v59  ;;  %v7567_v39 = vand.u32 4294901760, %v6124_v60  ;;  %v6188_v43 = vpack.c.bf16 %v807_v27, %v804_v24  ;;  %v505_v55 = vsel %vm181_vm7, %v5998_v52, %v504_v49  ;;  %631 = vmatpush1.bf16.msra.mxu1 %v560_v26  ;;  %v676_v24 = vld [vmem:[%s7532_s2 + $0x48] sm:$0xff] }
 0x21b   :  { %v473_v25 = vsel %vm147_vm5, %v7685_v16, %v472_v42  ;;  %v7686_v5 = vunpack.i.l.bf16 %v5920_v48  ;;  %v6200_v9 = vsub.f32 %v6091_v47, %v7569_v20  ;;  %v6202_v36 = vsub.f32 %v673_v32, %v756_v6 }
 0x21c   :  { %v7687_v27 = vunpack.i.h.bf16 %v5947_v4  ;;  %632 = vmatprep.subr.bf16.mxu1 %v565_v12  ;;  %v7566_v48 = vand.u32 4294901760, %v6166_v13  ;;  %v6212_v42 = vsub.f32 %v674_v40, %v759_v10  ;;  %v762_v45 = vand.u32 4294901760, %v675_v34  ;;  %4894 = vmatpush3.bf16.msra.mxu0 %v6177_v63  ;;  %v6222_v4 = vld [vmem:[%s7532_s2 + $0xd0] sm:$0xff] }
 0x21d   :  { %v508_v17 = vsel %vm181_vm7, %v504_v49, %v7686_v5  ;;  %v6214_v26 = vsub.f32 %v691_v3, %v810_v2  ;;  %v6216_v32 = vsub.f32 %v692_v53, %v813_v56  ;;  %v6229_v40 = vpack.c.bf16 %v759_v10, %v756_v6  ;;  %4896 = vmatprep.subr.bf16.mxu0 %v6188_v43  ;;  %v6255_v49 = vld [vmem:[%s7532_s2 + $0x58] sm:$0xff] }
 0x21e   :  { %v489_v52 = vsel %vm164_vm6, %v7687_v27, %v488_v58  ;;  %v568_v58 = vpack.c.bf16 %v505_v55, %v505_v55  ;;  %v569_v33 = vpack.c.bf16 %v508_v17, %v508_v17  ;;  %v765_v3 = vand.u32 4294901760, %v676_v24  ;;  %v6272_v27 = vld [vmem:[%s7532_s2 + $0xe8] sm:$0xff] }
 0x21f   :  { %v564_v59 = vpack.c.bf16 %v489_v52, %v473_v25  ;;  %7688 = vst [vmem:[#allocation7_spill] sm:$0xff] %v6214_v26  ;;  %7689 = vst [vmem:[#allocation8_spill] sm:$0xff] %v6216_v32  ;;  %v6232_v53 = vpack.c.bf16 %v813_v56, %v810_v2  ;;  %v994_v16 = vand.u32 4294901760, %v6157_v1  ;;  %v1001_v25 = vand.u32 4294901760, %v6164_v19  ;;  %v6250_v19 = vld [vmem:[%s7532_s2 + $0x50] sm:$0xff] }
 0x220   :  { %v888_v12 = vsub.f32 %v6096_v50, %v7568_v51  ;;  %v1007_v6 = vsub.f32 %v6124_v60, %v7567_v39  ;;  %v882_v10 = vand.u32 4294901760, %v6200_v9  ;;  %v7573_v2 = vand.u32 4294901760, %v6202_v36  ;;  %4898 = vmatpush3.bf16.msra.mxu0 %v6229_v40  ;;  %v6267_v9 = vld [vmem:[%s7532_s2 + $0xe0] sm:$0xff] }
 0x221   :  { %633 = vmatpush1.bf16.msra.mxu1 %v564_v59  ;;  %v7577_v56 = vand.u32 4294901760, %v6222_v4  ;;  %v7572_v1 = vand.u32 4294901760, %v6227_v11  ;;  %v1014_v55 = vsub.f32 %v6166_v13, %v7566_v48  ;;  %v7574_v5 = vand.u32 4294901760, %v6212_v42  ;;  %4900 = vmatprep.subr.bf16.mxu0 %v6232_v53 }
 0x222   :  { %4376 = vmatprep.subr.msk.bf16.mxu1 %vm257_vm8, %v569_v33  ;;  %v6261_v17 = vsub.f32 %v675_v34, %v762_v45  ;;  %v6274_v52 = vpack.c.bf16 %v765_v3, %v762_v45  ;;  %v580_v59 = vsel %vm257_vm8, %v568_v58, 0  ;;  %v7575_v33 = vand.u32 4294901760, %v6214_v26 }
 0x223   :  { %v7576_v34 = vand.u32 4294901760, %v6216_v32  ;;  %v6279_v48 = vsub.f32 %v676_v24, %v765_v3  ;;  %v4923_v39 = vpack.c.bf16 %v1001_v25, %v994_v16  ;;  %v889_v51 = vand.u32 4294901760, %v888_v12  ;;  %v6300_v16 = vld [vmem:[%s7532_s2 + $0x60] sm:$0xff] }
 0x224   :  { %7690 = vst [vmem:[#allocation9_spill] sm:$0xff] %v6274_v52  ;;  %v7578_v20 = vand.u32 4294901760, %v6250_v19  ;;  %v7579_v28 = vand.u32 4294901760, %v6255_v49  ;;  %v6288_v45 = vsub.f32 %v6222_v4, %v7577_v56  ;;  %v6293_v24 = vsub.f32 %v6227_v11, %v7572_v1  ;;  %4902 = vmatpush3.bf16.msra.mxu0 %v6274_v52 }
 0x225   :  { %7691 = vst [vmem:[#allocation10_spill] sm:$0xff] %v6279_v48  ;;  %635 = vmatpush1.bf16.msra.mxu1 %v580_v59  ;;  %v7583_v58 = vand.u32 4294901760, %v6267_v9  ;;  %v7586_v3 = vand.u32 4294901760, %v6272_v27  ;;  %v1008_v25 = vand.u32 4294901760, %v1007_v6  ;;  %v1015_v12 = vand.u32 4294901760, %v1014_v55 }
 0x226   :  { %4916 = vmatprep.subr.bf16.mxu1 %v6017_v31  ;;  %7692 = vst [vmem:[#allocation11_spill] sm:$0xff] %v6288_v45  ;;  %v6305_v31 = vld [vmem:[%s7532_s2 + $0x68] sm:$0xff]  ;;  %v895_v59 = vsub.f32 %v6202_v36, %v7573_v2  ;;  %v902_v46 = vsub.f32 %v6212_v42, %v7574_v5  ;;  %v1021_v1 = vsub.f32 %v6214_v26, %v7575_v33  ;;  %v7695_v56 = vand.u32 4294901760, %v6261_v17 }
 0x227   :  { %v1028_v6 = vsub.f32 %v6216_v32, %v7576_v34  ;;  %v6328_v5 = vsub.f32 %v6250_v19, %v7578_v20  ;;  %v6343_v20 = vsub.f32 %v6267_v9, %v7583_v58  ;;  %v4925_v2 = vpack.c.bf16 %v889_v51, %v882_v10 }
 0x228   :  { %4377 = vmatmul.mubr.msk.bf16.vlgmr.msra.gmra.mrb[4].mxu1 %vm253_vm9, %v6065_v29  ;;  %v6333_v29 = vsub.f32 %v6255_v49, %v7579_v28  ;;  %v6348_v28 = vsub.f32 %v6272_v27, %v7586_v3  ;;  %v4927_v33 = vpack.c.bf16 %v1015_v12, %v1008_v25  ;;  %v896_v55 = vand.u32 4294901760, %v895_v59 }
 0x229   :  { %4918 = vmatpush3.bf16.msra.mxu1 %v6030_v35  ;;  %7693 = vst [vmem:[#allocation12_spill] sm:$0xff] %v6343_v20  ;;  %v903_v34 = vand.u32 4294901760, %v902_v46  ;;  %v1022_v54 = vand.u32 4294901760, %v1021_v1  ;;  %v909_v35 = vsub.f32 %v6261_v17, %v7695_v56  ;;  %v7696_v32 = vand.u32 4294901760, %v6279_v48 }
 0x22a   :  { %4920 = vmatprep.subr.bf16.mxu1 %v6118_v37  ;;  %7694 = vst [vmem:[#allocation13_spill] sm:$0xff] %v6348_v28  ;;  %v1029_v37 = vand.u32 4294901760, %v1028_v6  ;;  %v7697_v51 = vand.u32 4294901760, %v6300_v16  ;;  %v7699_v10 = vand.u32 4294901760, %v6305_v31  ;;  %v7701_v56 = vand.u32 4294901760, %v6288_v45 }
 0x22b   :  { %v916_v58 = vsub.f32 %v6279_v48, %v7696_v32  ;;  %v4929_v6 = vpack.c.bf16 %v903_v34, %v896_v55  ;;  %v910_v3 = vand.u32 4294901760, %v909_v35  ;;  %v7704_v48 = vand.u32 4294901760, %v6333_v29 }
 0x22c   :  { %v6362_v46 = vsub.f32 %v6300_v16, %v7697_v51  ;;  %v6367_v1 = vsub.f32 %v6305_v31, %v7699_v10  ;;  %v1035_v32 = vsub.f32 %v6288_v45, %v7701_v56  ;;  %v4931_v51 = vpack.c.bf16 %v1029_v37, %v1022_v54 }
 0x22d   :  { %4922 = vmatpush3.bf16.msra.mxu1 %v6120_v18  ;;  %v7702_v18 = vand.u32 4294901760, %v6293_v24  ;;  %v917_v26 = vand.u32 4294901760, %v916_v58  ;;  %v7703_v10 = vand.u32 4294901760, %v6328_v5  ;;  %v930_v56 = vsub.f32 %v6333_v29, %v7704_v48 }
 0x22e   :  { %7698 = vst [vmem:[#allocation14_spill] sm:$0xff] %v6362_v46  ;;  %7700 = vst [vmem:[#allocation15_spill] sm:$0xff] %v6367_v1  ;;  %4924 = vmatprep.subr.bf16.mxu1 %v4923_v39  ;;  %v7595_v45 = vand.u32 4294901760, %v6362_v46  ;;  %v1036_v12 = vand.u32 4294901760, %v1035_v32  ;;  %v7705_v54 = vand.u32 4294901760, %v6343_v20 }
 0x22f   :  { %v1042_v25 = vsub.f32 %v6293_v24, %v7702_v18  ;;  %v923_v39 = vsub.f32 %v6328_v5, %v7703_v10  ;;  %v7594_v18 = vand.u32 4294901760, %v6367_v1  ;;  %v4933_v55 = vpack.c.bf16 %v917_v26, %v910_v3 }
 0x230   :  { %v1049_v34 = vsub.f32 %v6343_v20, %v7705_v54  ;;  %v931_v37 = vand.u32 4294901760, %v930_v56  ;;  %v937_v48 = vsub.f32 %v6362_v46, %v7595_v45 }
 0x231   :  { %4926 = vmatpush3.bf16.msra.mxu1 %v4925_v2  ;;  %v1043_v59 = vand.u32 4294901760, %v1042_v25  ;;  %v7706_v2 = vand.u32 4294901760, %v6348_v28  ;;  %v924_v35 = vand.u32 4294901760, %v923_v39  ;;  %v681_v39 = vld [vmem:[%s7532_s2 + $0x70] sm:$0xff] }
 0x232   :  { %4928 = vmatprep.subr.bf16.mxu1 %v4927_v33  ;;  %v944_v33 = vsub.f32 %v6367_v1, %v7594_v18  ;;  %v1050_v25 = vand.u32 4294901760, %v1049_v34  ;;  %v938_v20 = vand.u32 4294901760, %v937_v48  ;;  %v780_v56 = vand.u32 4294901760, %v681_v39 }
 0x233   :  { %v1056_v58 = vsub.f32 %v6348_v28, %v7706_v2  ;;  %v4935_v32 = vpack.c.bf16 %v1043_v59, %v1036_v12  ;;  %v4937_v54 = vpack.c.bf16 %v931_v37, %v924_v35  ;;  %v698_v12 = vld [vmem:[%s7532_s2 + $0xf8] sm:$0xff]  ;;  %v7711_v1 = vand.u32 4294901760, %v6255_v49 }
 0x234   :  { %v945_v2 = vand.u32 4294901760, %v944_v33  ;;  %v6413_v35 = vsub.f32 %v681_v39, %v780_v56  ;;  %v7717_v49 = vand.u32 4294901760, %v6305_v31 }
 0x235   :  { %4930 = vmatpush3.bf16.msra.mxu1 %v4929_v6  ;;  %v1057_v10 = vand.u32 4294901760, %v1056_v58  ;;  %v697_v6 = vld [vmem:[%s7532_s2 + $0xf0] sm:$0xff] }
 0x236   :  { %4932 = vmatprep.subr.bf16.mxu1 %v4931_v51  ;;  %v4941_v3 = vpack.c.bf16 %v945_v2, %v938_v20  ;;  %v828_v59 = vand.u32 4294901760, %v697_v6  ;;  %v831_v51 = vand.u32 4294901760, %v698_v12  ;;  %v682_v20 = vld [vmem:[%s7532_s2 + $0x78] sm:$0xff] }
 0x237   :  { %v4939_v26 = vpack.c.bf16 %v1057_v10, %v1050_v25  ;;  %v783_v34 = vand.u32 4294901760, %v682_v20 }
 0x238   :  { %v6409_v58 = vsub.f32 %v697_v6, %v828_v59 }
 0x239   :  { %4934 = vmatpush3.bf16.msra.mxu1 %v4933_v55  ;;  %v6411_v55 = vsub.f32 %v698_v12, %v831_v51  ;;  %v6415_v37 = vsub.f32 %v682_v20, %v783_v34  ;;  %v7707_v20 = vand.u32 4294901760, %v6222_v4  ;;  %v7713_v4 = vand.u32 4294901760, %v6267_v9 }
 0x23a   :  { %4936 = vmatprep.subr.bf16.mxu1 %v4935_v32  ;;  %v7593_v48 = vand.u32 4294901760, %v6409_v58  ;;  %v7599_v32 = vand.u32 4294901760, %v6413_v35  ;;  %v4947_v9 = vpack.c.bf16 %v5852_v62, %v5847_v61 }
 0x23b   :  { %v7596_v33 = vand.u32 4294901760, %v6411_v55  ;;  %v7602_v25 = vand.u32 4294901760, %v6415_v37 }
 0x23c   :  { %v1063_v10 = vsub.f32 %v6409_v58, %v7593_v48  ;;  %v951_v2 = vsub.f32 %v6413_v35, %v7599_v32  ;;  %v7708_v48 = vand.u32 4294901760, %v6227_v11  ;;  %v7714_v11 = vand.u32 4294901760, %v6272_v27  ;;  %v7734_v27 = vld [vmem:[#allocation10_spill] sm:$0xff] }
 0x23d   :  { %4938 = vmatpush3.bf16.msra.mxu1 %v4937_v54  ;;  %v1070_v54 = vsub.f32 %v6411_v55, %v7596_v33  ;;  %v7710_v33 = vand.u32 4294901760, %v6250_v19  ;;  %v7716_v19 = vand.u32 4294901760, %v6300_v16  ;;  %v6560_v16 = vld [vmem:[%s7532_s2 + $0x1f8] sm:$0xff] }
 0x23e   :  { %4940 = vmatprep.subr.bf16.mxu1 %v4939_v26  ;;  %v958_v26 = vsub.f32 %v6415_v37, %v7602_v25  ;;  %v952_v12 = vand.u32 4294901760, %v951_v2  ;;  %v6437_v18 = vpack.c.bf16 %v7708_v48, %v7707_v20  ;;  %v6451_v48 = vpack.c.bf16 %v7714_v11, %v7713_v4  ;;  %7733 = vst [vmem:[#allocation30_spill] sm:$0xff] %v6560_v16 }
 0x23f   :  { %v1071_v6 = vand.u32 4294901760, %v1070_v54  ;;  %v6443_v32 = vpack.c.bf16 %v7711_v1, %v7710_v33  ;;  %v6458_v1 = vpack.c.bf16 %v7717_v49, %v7716_v19  ;;  %v4951_v4 = vpack.c.bf16 %v5899_v22, %v5886_v15 }
 0x240   :  { %v959_v39 = vand.u32 4294901760, %v958_v26  ;;  %7709 = vst [vmem:[#allocation16_spill] sm:$0xff] %v6437_v18  ;;  %4904 = vmatprep.subr.bf16.mxu0 %v6437_v18  ;;  %7715 = vst [vmem:[#allocation18_spill] sm:$0xff] %v6451_v48  ;;  %v4953_v11 = vpack.c.bf16 %v5936_v8, %v5914_v38  ;;  %v4955_v19 = vpack.c.bf16 %v6060_v0, %v6035_v57 }
 0x241   :  { %4942 = vmatpush3.bf16.msra.mxu1 %v4941_v3  ;;  %v1064_v3 = vand.u32 4294901760, %v1063_v10  ;;  %7712 = vst [vmem:[#allocation17_spill] sm:$0xff] %v6443_v32  ;;  %4906 = vmatpush3.bf16.msra.mxu0 %v6443_v32  ;;  %7718 = vst [vmem:[#allocation19_spill] sm:$0xff] %v6458_v1  ;;  %v4957_v49 = vpack.c.bf16 %v6096_v50, %v6091_v47 }
 0x242   :  { %v4945_v46 = vpack.c.bf16 %v959_v39, %v952_v12  ;;  %4908 = vmatprep.subr.bf16.mxu0 %v6451_v48  ;;  %v4949_v39 = vpack.c.bf16 %v5881_v14, %v5867_v7 }
 0x243   :  { %v4943_v45 = vpack.c.bf16 %v1071_v6, %v1064_v3 }
 0x245   :  { %4944 = vmatprep.subr.bf16.mxu1 %v4943_v45  ;;  %4910 = vmatpush3.bf16.msra.mxu0 %v6458_v1  ;;  %v6462_v45 = vpack.c.bf16 %v831_v51, %v828_v59 }
 0x246   :  { %4946 = vmatpush3.bf16.msra.mxu1 %v4945_v46  ;;  %v6464_v46 = vpack.c.bf16 %v783_v34, %v780_v56 }
 0x247   :  { %4980 = vmatprep.subr.bf16.mxu1 %v6027_v23  ;;  %7719 = vst [vmem:[#allocation20_spill] sm:$0xff] %v6462_v45  ;;  %4912 = vmatprep.subr.bf16.mxu0 %v6462_v45 }
 0x248   :  { %7720 = vst [vmem:[#allocation21_spill] sm:$0xff] %v6464_v46 }
 0x249   :  { %4914 = vmatpush3.bf16.msra.mxu0 %v6464_v46 }
 0x24a   :  { %4948 = vmatprep.subr.bf16.mxu0 %v4947_v9 }
 0x2e6   :  { %v619_v31 = vpop.f32.mrb[4].mxu0 }
 0x2e7   :  { %v6474_v33 = vand.u32 4294901760, %v619_v31  ;;  %v621_v59 = vpop.f32.mrb[5].mxu0 }
 0x2e8   :  { %v6476_v51 = vand.u32 4294901760, %v621_v59  ;;  %v623_v56 = vpop.f32.mrb[6].mxu0 }
 0x2e9   :  { %7721 = vst [vmem:[#allocation22_spill] sm:$0xff] %v6474_v33  ;;  %v6479_v34 = vsub.f32 %v619_v31, %v6474_v33  ;;  %v624_v10 = vpop.f32.mrb[7].mxu0  ;;  %v4959_v31 = vpack.c.bf16 %v6166_v13, %v6124_v60  ;;  %v6518_v56 = vld [vmem:[%s7532_s2 + $0x158] sm:$0xff] }
 0x2ea   :  { %v834_v54 = vsub.f32 %v621_v59, %v6476_v51  ;;  %1074 = vmatprep.mubr.f32.mxu1 %v6476_v51  ;;  %v6513_v59 = vld [vmem:[%s7532_s2 + $0x150] sm:$0xff]  ;;  %7724 = vst [vmem:[#allocation25_spill] sm:$0xff] %v6518_v56 }
 0x2eb   :  { %v7603_v2 = vand.u32 4294901760, %v6479_v34  ;;  %1076 = vmatmul.mubr.f32.vlgmr.msra.gmra.mrb[8].mxu1 %v6474_v33  ;;  %7723 = vst [vmem:[#allocation24_spill] sm:$0xff] %v6513_v59  ;;  %v6615_v33 = vld [vmem:[%s7532_s2 + $0x180] sm:$0xff] }
 0x2ec   :  { %4982 = vmatpush3.bf16.msra.mxu1 %v6071_v21  ;;  %v835_v26 = vand.u32 4294901760, %v834_v54 }
 0x2ed   :  { %v842_v3 = vsub.f32 %v6479_v34, %v7603_v2  ;;  %4984 = vmatprep.subr.bf16.mxu1 %v6077_v44  ;;  %v4965_v2 = vpack.c.bf16 %v7734_v27, %v6261_v17 }
 0x2ee   :  { %1318 = vmatprep.mubr.f32.mxu1 %v835_v26  ;;  %v836_v6 = vsub.f32 %v834_v54, %v835_v26 }
 0x2ef   :  { %v843_v20 = vand.u32 4294901760, %v842_v3  ;;  %v4961_v3 = vpack.c.bf16 %v6212_v42, %v6202_v36 }
 0x2f0   :  { %4986 = vmatpush3.bf16.msra.mxu1 %v6130_v30  ;;  %v837_v12 = vand.u32 4294901760, %v836_v6  ;;  %v7605_v6 = vand.u32 4294901760, %v6513_v59 }
 0x2f1   :  { %4988 = vmatprep.subr.bf16.mxu1 %v6146_v41 }
 0x2f2   :  { %838 = vmatprep.mubr.f32.mxu0 %v837_v12  ;;  %v7609_v12 = vand.u32 4294901760, %v6518_v56  ;;  %v6568_v25 = vsub.f32 %v6513_v59, %v7605_v6  ;;  %v7739_v6 = vld [vmem:[#allocation11_spill] sm:$0xff] }
 0x2f3   :  { %844 = vmatmul.mubr.f32.vlgmr.msra.gmra.mrb[8].mxu0 %v843_v20  ;;  %v6535_v20 = vld [vmem:[%s7532_s2 + $0x1e8] sm:$0xff]  ;;  %v4967_v59 = vpack.c.bf16 %v6293_v24, %v7739_v6 }
 0x2f4   :  { %4950 = vmatpush3.bf16.msra.mxu0 %v4949_v39  ;;  %4990 = vmatpush3.bf16.msra.mxu1 %v6177_v63  ;;  %v6530_v39 = vld [vmem:[%s7532_s2 + $0x1e0] sm:$0xff]  ;;  %7727 = vst [vmem:[#allocation28_spill] sm:$0xff] %v6535_v20  ;;  %7735 = vst [vmem:[#allocation10_spill] sm:$0xff] %v6568_v25 }
 0x2f5   :  { %1211 = vmatprep.mubr.f32.mxu0 %v834_v54  ;;  %4952 = vmatprep.subr.bf16.mxu0 %v4951_v4  ;;  %7726 = vst [vmem:[#allocation27_spill] sm:$0xff] %v6530_v39  ;;  %v7728_v4 = vld [vmem:[#allocation7_spill] sm:$0xff] }
 0x2f6   :  { %4992 = vmatprep.subr.bf16.mxu1 %v6188_v43 }
 0x2f8   :  { %4954 = vmatpush3.bf16.msra.mxu0 %v4953_v11  ;;  %4994 = vmatpush3.bf16.msra.mxu1 %v6229_v40  ;;  %v7729_v11 = vld [vmem:[#allocation8_spill] sm:$0xff] }
 0x2f9   :  { %4956 = vmatprep.subr.bf16.mxu0 %v4955_v19  ;;  %4996 = vmatprep.subr.bf16.mxu1 %v6232_v53  ;;  %v4963_v19 = vpack.c.bf16 %v7729_v11, %v7728_v4 }
 0x2fb   :  { %v6505_v9 = vpop.f32.mrb[4].mxu1 }
 0x2fc   :  { %7722 = vst [vmem:[#allocation23_spill] sm:$0xff] %v6505_v9  ;;  %v6520_v10 = vpop.f32.mrb[5].mxu1  ;;  %4958 = vmatpush3.bf16.msra.mxu0 %v4957_v49  ;;  %4998 = vmatpush3.bf16.msra.mxu1 %v6274_v52  ;;  %v6543_v49 = vld [vmem:[%s7532_s2 + $0x160] sm:$0xff]  ;;  %v6578_v9 = vld [vmem:[%s7532_s2 + $0x170] sm:$0xff] }
 0x2fd   :  { %7725 = vst [vmem:[#allocation26_spill] sm:$0xff] %v6520_v10  ;;  %v664_v54 = vpop.f32.mrb[6].mxu1  ;;  %4960 = vmatprep.subr.bf16.mxu0 %v4959_v31  ;;  %5000 = vmatprep.subr.bf16.mxu1 %v6437_v18  ;;  %7730 = vst [vmem:[#allocation7_spill] sm:$0xff] %v6543_v49  ;;  %v6555_v31 = vld [vmem:[%s7532_s2 + $0x1f0] sm:$0xff]  ;;  %v7740_v10 = vand.u32 4294901760, %v6530_v39 }
 0x2fe   :  { %v665_v26 = vpop.f32.mrb[7].mxu1  ;;  %v6548_v54 = vld [vmem:[%s7532_s2 + $0x168] sm:$0xff]  ;;  %7732 = vst [vmem:[#allocation29_spill] sm:$0xff] %v6555_v31  ;;  %7737 = vst [vmem:[#allocation32_spill] sm:$0xff] %v6578_v9 }
 0x2ff   :  { %7731 = vst [vmem:[#allocation8_spill] sm:$0xff] %v6548_v54  ;;  %v6573_v26 = vsub.f32 %v6518_v56, %v7609_v12  ;;  %v6595_v18 = vsub.f32 %v6530_v39, %v7740_v10  ;;  %v7742_v12 = vld [vmem:[#allocation12_spill] sm:$0xff]  ;;  %v7744_v56 = vand.u32 4294901760, %v6548_v54 }
 0x300   :  { %4962 = vmatpush3.bf16.msra.mxu0 %v4961_v3  ;;  %5002 = vmatpush3.bf16.msra.mxu1 %v6443_v32  ;;  %v6583_v3 = vld [vmem:[%s7532_s2 + $0x178] sm:$0xff]  ;;  %v4969_v32 = vpack.c.bf16 %v6333_v29, %v6328_v5 }
 0x301   :  { %7736 = vst [vmem:[#allocation31_spill] sm:$0xff] %v6573_v26  ;;  %7738 = vst [vmem:[#allocation33_spill] sm:$0xff] %v6583_v3  ;;  %4964 = vmatprep.subr.bf16.mxu0 %v4963_v19  ;;  %5004 = vmatprep.subr.bf16.mxu1 %v6451_v48  ;;  %v7741_v19 = vand.u32 4294901760, %v6535_v20  ;;  %v6625_v10 = vsub.f32 %v6548_v54, %v7744_v56  ;;  %v7748_v56 = vand.u32 4294901760, %v6573_v26 }
 0x303   :  { %v6600_v48 = vsub.f32 %v6535_v20, %v7741_v19  ;;  %v4971_v19 = vpack.c.bf16 %v6348_v28, %v7742_v12  ;;  %v7745_v20 = vand.u32 4294901760, %v6555_v31 }
 0x304   :  { %4966 = vmatpush3.bf16.msra.mxu0 %v4965_v2  ;;  %5006 = vmatpush3.bf16.msra.mxu1 %v6458_v1  ;;  %v7743_v2 = vand.u32 4294901760, %v6543_v49  ;;  %v6651_v1 = vld [vmem:[%s7532_s2 + $0x100] sm:$0xff] }
 0x305   :  { %4968 = vmatprep.subr.bf16.mxu0 %v4967_v59  ;;  %5008 = vmatprep.subr.bf16.mxu1 %v6462_v45  ;;  %v6630_v59 = vld [vmem:[%s7532_s2 + $0x188] sm:$0xff]  ;;  %v6635_v39 = vsub.f32 %v6555_v31, %v7745_v20  ;;  %v7746_v45 = vand.u32 4294901760, %v6560_v16  ;;  %v6693_v31 = vld [vmem:[%s7532_s2 + $0x190] sm:$0xff] }
 0x306   :  { %v6620_v52 = vsub.f32 %v6543_v49, %v7743_v2  ;;  %v7747_v49 = vand.u32 4294901760, %v6568_v25  ;;  %v6656_v20 = vld [vmem:[%s7532_s2 + $0x108] sm:$0xff] }
 0x307   :  { %v6640_v2 = vsub.f32 %v6560_v16, %v7746_v45  ;;  %v7750_v16 = vand.u32 4294901760, %v6578_v9  ;;  %v7754_v25 = vld [vmem:[#allocation15_spill] sm:$0xff]  ;;  %v7758_v45 = vand.u32 4294901760, %v6479_v34 }
 0x308   :  { %v6646_v54 = vpack.c.bf16 %v7748_v56, %v7747_v49  ;;  %v7751_v49 = vand.u32 4294901760, %v6583_v3  ;;  %4970 = vmatpush3.bf16.msra.mxu0 %v4969_v32  ;;  %5010 = vmatpush3.bf16.msra.mxu1 %v6464_v46  ;;  %v7756_v32 = vand.u32 4294901760, %v6600_v48  ;;  %v7762_v46 = vand.u32 4294901760, %v5852_v62 }
 0x309   :  { %v6663_v26 = vsub.f32 %v6578_v9, %v7750_v16  ;;  %4972 = vmatprep.subr.bf16.mxu0 %v4971_v19  ;;  %5044 = vmatprep.subr.bf16.mxu1 %v6027_v23  ;;  %v7633_v16 = vand.u32 4294901760, %v6620_v52  ;;  %v7632_v19 = vand.u32 4294901760, %v6635_v39  ;;  %v6711_v9 = vld [vmem:[%s7532_s2 + $0x198] sm:$0xff] }
 0x30a   :  { %7749 = vst [vmem:[#allocation11_spill] sm:$0xff] %v6646_v54  ;;  %v6668_v56 = vsub.f32 %v6583_v3, %v7751_v49  ;;  %v7753_v54 = vld [vmem:[#allocation14_spill] sm:$0xff]  ;;  %v7755_v49 = vand.u32 4294901760, %v6595_v18 }
 0x30b   :  { %v4973_v28 = vpack.c.bf16 %v7754_v25, %v7753_v54  ;;  %1322 = vmatmul.mubr.f32.vlgmr.msra.gmra.mrb[10].mxu1 %v7758_v45  ;;  %v7761_v45 = vand.u32 4294901760, %v5847_v61  ;;  %v7766_v61 = vand.u32 4294901760, %v6615_v33 }
 0x30c   :  { %7752 = vst [vmem:[#allocation12_spill] sm:$0xff] %v6668_v56  ;;  %v6682_v3 = vpack.c.bf16 %v7756_v32, %v7755_v49  ;;  %v7759_v32 = vand.u32 4294901760, %v6625_v10  ;;  %5046 = vmatpush3.bf16.msra.mxu1 %v6071_v21  ;;  %v7763_v49 = vand.u32 4294901760, %v6640_v2  ;;  %1592 = vmatprep.mubr.f32.mxu1 %v6476_v51  ;;  %v7765_v21 = vpack.c.bf16 %v6411_v55, %v6409_v58 }
 0x30d   :  { %4974 = vmatpush3.bf16.msra.mxu0 %v4973_v28  ;;  %v5011_v23 = vpack.c.bf16 %v7762_v46, %v7761_v45  ;;  %v6726_v62 = vsub.f32 %v6615_v33, %v7766_v61  ;;  %v7768_v28 = vand.u32 4294901760, %v6630_v59  ;;  %5048 = vmatprep.subr.bf16.mxu1 %v6077_v44  ;;  %v7775_v61 = vand.u32 4294901760, %v6656_v20 }
 0x30e   :  { %7757 = vst [vmem:[#allocation14_spill] sm:$0xff] %v6682_v3  ;;  %v6701_v25 = vpack.c.bf16 %v7759_v32, %v7633_v16  ;;  %v6717_v3 = vpack.c.bf16 %v7763_v49, %v7632_v19  ;;  %4976 = vmatprep.subr.bf16.mxu0 %v7765_v21  ;;  %v7770_v32 = vand.u32 4294901760, %v6663_v26  ;;  %v7771_v49 = vand.u32 4294901760, %v6668_v56 }
 0x30f   :  { %7767 = vst [vmem:[#allocation36_spill] sm:$0xff] %v6726_v62  ;;  %v6731_v46 = vsub.f32 %v6630_v59, %v7768_v28  ;;  %v7773_v21 = vand.u32 4294901760, %v6651_v1  ;;  %v6748_v16 = vsub.f32 %v6656_v20, %v7775_v61  ;;  %v7777_v44 = vpack.c.bf16 %v6415_v37, %v6413_v35 }
 0x310   :  { %7760 = vst [vmem:[#allocation34_spill] sm:$0xff] %v6701_v25  ;;  %7764 = vst [vmem:[#allocation35_spill] sm:$0xff] %v6717_v3  ;;  %v6737_v45 = vpack.c.bf16 %v7771_v49, %v7770_v32  ;;  %v6754_v3 = vld [vmem:[%s7532_s2 + $0x110] sm:$0xff]  ;;  %5050 = vmatpush3.bf16.msra.mxu1 %v6130_v30  ;;  %v7778_v49 = vand.u32 4294901760, %v5867_v7  ;;  %v7780_v28 = vand.u32 4294901760, %v5886_v15  ;;  %v7638_v32 = vand.u32 4294901760, %v6726_v62 }
 0x311   :  { %7769 = vst [vmem:[#allocation37_spill] sm:$0xff] %v6731_v46  ;;  %v6743_v19 = vsub.f32 %v6651_v1, %v7773_v21  ;;  %7776 = vst [vmem:[#allocation40_spill] sm:$0xff] %v6748_v16  ;;  %4978 = vmatpush3.bf16.msra.mxu0 %v7777_v44  ;;  %v7779_v21 = vand.u32 4294901760, %v5881_v14  ;;  %5052 = vmatprep.subr.bf16.mxu1 %v6146_v41  ;;  %v7636_v56 = vand.u32 4294901760, %v6731_v46  ;;  %v7639_v44 = vand.u32 4294901760, %v6754_v3  ;;  %v6783_v15 = vld [vmem:[%s7532_s2 + $0x118] sm:$0xff] }
 0x312   :  { %7772 = vst [vmem:[#allocation38_spill] sm:$0xff] %v6737_v45  ;;  %5012 = vmatprep.subr.bf16.mxu0 %v5011_v23  ;;  %v7781_v45 = vand.u32 4294901760, %v5899_v22  ;;  %v7782_v14 = vand.u32 4294901760, %v6693_v31  ;;  %v7784_v22 = vand.u32 4294901760, %v6711_v9 }
 0x313   :  { %7774 = vst [vmem:[#allocation39_spill] sm:$0xff] %v6743_v19  ;;  %v5013_v61 = vpack.c.bf16 %v7779_v21, %v7778_v49  ;;  %v7637_v30 = vand.u32 4294901760, %v6743_v19  ;;  %v7788_v21 = vand.u32 4294901760, %v6035_v57  ;;  %v7640_v57 = vand.u32 4294901760, %v6783_v15 }
 0x314   :  { %v5015_v25 = vpack.c.bf16 %v7781_v45, %v7780_v28  ;;  %v6778_v23 = vsub.f32 %v6693_v31, %v7782_v14  ;;  %1214 = vmatmul.mubr.f32.vlgmr.msra.gmra.mrb[10].mxu0 %v6479_v34  ;;  %v6789_v41 = vsub.f32 %v6711_v9, %v7784_v22  ;;  %v7786_v45 = vand.u32 4294901760, %v5914_v38  ;;  %v6803_v34 = vld [vmem:[%s7532_s2 + $0x1a0] sm:$0xff]  ;;  %5054 = vmatpush3.bf16.msra.mxu1 %v6177_v63 }
 0x315   :  { %5014 = vmatpush3.bf16.msra.mxu0 %v5013_v61  ;;  %1488 = vmatprep.mubr.f32.mxu0 %v6476_v51  ;;  %v7787_v28 = vand.u32 4294901760, %v5936_v8  ;;  %v7789_v14 = vand.u32 4294901760, %v6060_v0  ;;  %v6808_v61 = vld [vmem:[%s7532_s2 + $0x1a8] sm:$0xff]  ;;  %v1827_v38 = vsub.f32 %v6726_v62, %v7638_v32  ;;  %v1834_v8 = vsub.f32 %v6731_v46, %v7636_v56 }
 0x316   :  { %7783 = vst [vmem:[#allocation41_spill] sm:$0xff] %v6778_v23  ;;  %7785 = vst [vmem:[#allocation42_spill] sm:$0xff] %v6789_v41  ;;  %5016 = vmatprep.subr.bf16.mxu0 %v5015_v25  ;;  %v6821_v0 = vsub.f32 %v6754_v3, %v7639_v44  ;;  %5056 = vmatprep.subr.bf16.mxu1 %v6188_v43  ;;  %v1715_v63 = vsub.f32 %v6743_v19, %v7637_v30  ;;  %v7791_v25 = vand.u32 4294901760, %v6748_v16 }
 0x317   :  { %v5017_v49 = vpack.c.bf16 %v7787_v28, %v7786_v45  ;;  %v5019_v7 = vpack.c.bf16 %v7789_v14, %v7788_v21  ;;  %v7792_v14 = vand.u32 4294901760, %v6091_v47  ;;  %v7793_v43 = vand.u32 4294901760, %v6096_v50  ;;  %v6853_v47 = vld [vmem:[%s7532_s2 + $0x120] sm:$0xff] }
 0x318   :  { %7790 = vst [vmem:[#allocation43_spill] sm:$0xff] %v6821_v0  ;;  %v1722_v51 = vsub.f32 %v6748_v16, %v7791_v25  ;;  %v7794_v30 = vand.u32 4294901760, %v6124_v60  ;;  %v7795_v32 = vand.u32 4294901760, %v6166_v13  ;;  %v7796_v25 = vand.u32 4294901760, %v6202_v36  ;;  %5058 = vmatpush3.bf16.msra.mxu1 %v6229_v40 }
 0x319   :  { %5018 = vmatpush3.bf16.msra.mxu0 %v5017_v49  ;;  %v5021_v56 = vpack.c.bf16 %v7793_v43, %v7792_v14  ;;  %v7797_v22 = vand.u32 4294901760, %v6212_v42  ;;  %v7798_v28 = vand.u32 4294901760, %v7728_v4  ;;  %v7799_v21 = vand.u32 4294901760, %v7729_v11  ;;  %v6865_v42 = vld [vmem:[%s7532_s2 + $0x128] sm:$0xff]  ;;  %5060 = vmatprep.subr.bf16.mxu1 %v6232_v53 }
 0x31a   :  { %v5023_v44 = vpack.c.bf16 %v7795_v32, %v7794_v30  ;;  %5020 = vmatprep.subr.bf16.mxu0 %v5019_v7  ;;  %v1828_v50 = vand.u32 4294901760, %v1827_v38  ;;  %v1835_v60 = vand.u32 4294901760, %v1834_v8  ;;  %v7641_v13 = vand.u32 4294901760, %v6821_v0 }
 0x31b   :  { %v5025_v45 = vpack.c.bf16 %v7797_v22, %v7796_v25  ;;  %v5027_v49 = vpack.c.bf16 %v7799_v21, %v7798_v28  ;;  %v6860_v36 = vsub.f32 %v6783_v15, %v7640_v57  ;;  %v7801_v4 = vand.u32 4294901760, %v6261_v17 }
 0x31c   :  { %v7802_v40 = vand.u32 4294901760, %v7734_v27  ;;  %v1716_v32 = vand.u32 4294901760, %v1715_v63  ;;  %v1723_v30 = vand.u32 4294901760, %v1722_v51  ;;  %v7803_v7 = vand.u32 4294901760, %v6778_v23  ;;  %v6892_v63 = vld [vmem:[%s7532_s2 + $0x1b0] sm:$0xff]  ;;  %v6897_v51 = vld [vmem:[%s7532_s2 + $0x1b8] sm:$0xff] }
 0x31d   :  { %7800 = vst [vmem:[#allocation44_spill] sm:$0xff] %v6860_v36  ;;  %v7804_v8 = vand.u32 4294901760, %v6789_v41  ;;  %v7805_v28 = vand.u32 4294901760, %v6803_v34  ;;  %v7807_v53 = vand.u32 4294901760, %v6808_v61  ;;  %5022 = vmatpush3.bf16.msra.mxu0 %v5021_v56  ;;  %v7809_v14 = vand.u32 4294901760, %v7739_v6  ;;  %v7816_v56 = vld [vmem:[#allocation9_spill] sm:$0xff] }
 0x31e   :  { %v5029_v11 = vpack.c.bf16 %v7802_v40, %v7801_v4  ;;  %v1841_v38 = vsub.f32 %v6778_v23, %v7803_v7  ;;  %v7810_v43 = vand.u32 4294901760, %v6293_v24  ;;  %v7811_v4 = vand.u32 4294901760, %v6328_v5  ;;  %5062 = vmatpush3.bf16.msra.mxu1 %v7816_v56  ;;  %5024 = vmatprep.subr.bf16.mxu0 %v5023_v44  ;;  %v7818_v5 = vld [vmem:[#allocation15_spill] sm:$0xff]  ;;  %v6956_v56 = vld [vmem:[%s7532_s2 + $0x1c0] sm:$0xff] }
 0x31f   :  { %v1848_v22 = vsub.f32 %v6789_v41, %v7804_v8  ;;  %v6881_v21 = vsub.f32 %v6803_v34, %v7805_v28  ;;  %v6886_v17 = vsub.f32 %v6808_v61, %v7807_v53  ;;  %v7812_v40 = vand.u32 4294901760, %v6333_v29  ;;  %v7814_v28 = vld [vmem:[#allocation13_spill] sm:$0xff] }
 0x320   :  { %v5031_v25 = vpack.c.bf16 %v7810_v43, %v7809_v14  ;;  %v7813_v8 = vand.u32 4294901760, %v7742_v12  ;;  %v7815_v53 = vand.u32 4294901760, %v7814_v28  ;;  %v7643_v27 = vand.u32 4294901760, %v6865_v42 }
 0x321   :  { %7806 = vst [vmem:[#allocation45_spill] sm:$0xff] %v6881_v21  ;;  %7808 = vst [vmem:[#allocation46_spill] sm:$0xff] %v6886_v17  ;;  %v6907_v7 = vpack.c.bf16 %v7812_v40, %v7811_v4  ;;  %v6917_v6 = vpack.c.bf16 %v1835_v60, %v1828_v50  ;;  %v7817_v24 = vand.u32 4294901760, %v7753_v54  ;;  %v7819_v14 = vand.u32 4294901760, %v7818_v5  ;;  %v7820_v4 = vld [vmem:[#allocation16_spill] sm:$0xff]  ;;  %5026 = vmatpush3.bf16.msra.mxu0 %v5025_v45  ;;  %v7829_v45 = vld [vmem:[#allocation17_spill] sm:$0xff] }
 0x322   :  { %v6913_v57 = vpack.c.bf16 %v7815_v53, %v7813_v8  ;;  %v6928_v12 = vsub.f32 %v6821_v0, %v7641_v13  ;;  %v7642_v43 = vand.u32 4294901760, %v6860_v36  ;;  %5064 = vmatprep.subr.bf16.mxu1 %v7820_v4  ;;  %v6932_v40 = vpack.c.bf16 %v1723_v30, %v1716_v32  ;;  %v6939_v60 = vld [vmem:[%s7532_s2 + $0x130] sm:$0xff]  ;;  %v6944_v8 = vld [vmem:[%s7532_s2 + $0x138] sm:$0xff]  ;;  %v7828_v53 = vld [vmem:[#allocation26_spill] sm:$0xff]  ;;  %5028 = vmatprep.subr.bf16.mxu0 %v5027_v49 }
 0x323   :  { %v6923_v29 = vpack.c.bf16 %v7819_v14, %v7817_v24  ;;  %v1842_v44 = vand.u32 4294901760, %v1841_v38  ;;  %v7644_v50 = vand.u32 4294901760, %v6892_v63  ;;  %v1849_v28 = vand.u32 4294901760, %v1848_v22  ;;  %v6961_v24 = vld [vmem:[%s7532_s2 + $0x1c8] sm:$0xff]  ;;  %5066 = vmatpush3.bf16.msra.mxu1 %v7829_v45  ;;  %v7830_v49 = vld [vmem:[#allocation18_spill] sm:$0xff] }
 0x324   :  { %v7821_v30 = vand.u32 4294901760, %v6853_v47  ;;  %v7823_v22 = vand.u32 4294901760, %v6409_v58  ;;  %v7824_v5 = vand.u32 4294901760, %v6411_v55  ;;  %v7825_v4 = vand.u32 4294901760, %v6413_v35  ;;  %5068 = vmatprep.subr.bf16.mxu1 %v7830_v49  ;;  %v7021_v49 = vld [vmem:[%s7532_s2 + $0x1d8] sm:$0xff] }
 0x325   :  { %v6978_v32 = vsub.f32 %v6865_v42, %v7643_v27  ;;  %v6981_v54 = vand.u32 4294901760, %v7828_v53  ;;  %v1730_v58 = vand.u32 4294901760, %v6928_v12  ;;  %v1736_v55 = vsub.f32 %v6860_v36, %v7642_v43  ;;  %v7016_v27 = vld [vmem:[%s7532_s2 + $0x1d0] sm:$0xff]  ;;  %7832 = vst [vmem:[#allocation15_spill] sm:$0xff] %v7021_v49  ;;  %5030 = vmatpush3.bf16.msra.mxu0 %v5029_v11 }
 0x326   :  { %v6951_v38 = vsub.f32 %v6853_v47, %v7821_v30  ;;  %v6967_v14 = vpack.c.bf16 %v7824_v5, %v7823_v22  ;;  %v7826_v30 = vand.u32 4294901760, %v6415_v37  ;;  %v6993_v22 = vld [vmem:[%s7532_s2 + $0x140] sm:$0xff]  ;;  %v6998_v5 = vld [vmem:[%s7532_s2 + $0x148] sm:$0xff]  ;;  %v7004_v12 = vsub.f32 %v6892_v63, %v7644_v50  ;;  %5032 = vmatprep.subr.bf16.mxu0 %v5031_v25  ;;  %v7838_v43 = vld [vmem:[#allocation20_spill] sm:$0xff] }
 0x327   :  { %7827 = vst [vmem:[#allocation9_spill] sm:$0xff] %v6978_v32  ;;  %v5111_v50 = vpack.c.bf16 %v1849_v28, %v1842_v44  ;;  %v7833_v37 = vand.u32 4294901760, %v6881_v21  ;;  %v7834_v35 = vand.u32 4294901760, %v6886_v17  ;;  %v7035_v44 = vsub.f32 %v7828_v53, %v6981_v54  ;;  %v7835_v28 = vld [vmem:[#allocation19_spill] sm:$0xff] }
 0x328   :  { %7822 = vst [vmem:[#allocation13_spill] sm:$0xff] %v6951_v38  ;;  %v6973_v13 = vpack.c.bf16 %v7826_v30, %v7825_v4  ;;  %v7831_v4 = vand.u32 4294901760, %v6897_v51  ;;  %5070 = vmatpush3.bf16.msra.mxu1 %v7835_v28  ;;  %v7837_v11 = vand.u32 4294901760, %v6944_v8  ;;  %v7839_v28 = vand.u32 4294901760, %v6956_v56 }
 0x329   :  { %v1862_v45 = vsub.f32 %v6886_v17, %v7834_v35  ;;  %5072 = vmatprep.subr.bf16.mxu1 %v7838_v43  ;;  %v7840_v17 = vand.u32 4294901760, %v6961_v24  ;;  %v7841_v41 = vand.u32 4294901760, %v6951_v38  ;;  %5034 = vmatpush3.bf16.msra.mxu0 %v6907_v7  ;;  %v7842_v25 = vand.u32 4294901760, %v6978_v32 }
 0x32a   :  { %v7009_v30 = vsub.f32 %v6897_v51, %v7831_v4  ;;  %v1855_v4 = vsub.f32 %v6881_v21, %v7833_v37  ;;  %v7836_v37 = vand.u32 4294901760, %v6939_v60  ;;  %v7046_v36 = vsub.f32 %v6944_v8, %v7837_v11  ;;  %5036 = vmatprep.subr.bf16.mxu0 %v6913_v57 }
 0x32b   :  { %v7061_v11 = vsub.f32 %v6961_v24, %v7840_v17  ;;  %v1737_v21 = vand.u32 4294901760, %v1736_v55  ;;  %v1863_v23 = vand.u32 4294901760, %v1862_v45  ;;  %v1743_v43 = vsub.f32 %v6951_v38, %v7841_v41 }
 0x32c   :  { %v7041_v35 = vsub.f32 %v6939_v60, %v7836_v37  ;;  %v7056_v37 = vsub.f32 %v6956_v56, %v7839_v28  ;;  %v1856_v0 = vand.u32 4294901760, %v1855_v4  ;;  %v1750_v53 = vsub.f32 %v6978_v32, %v7842_v25  ;;  %v7845_v4 = vld [vmem:[#allocation21_spill] sm:$0xff] }
 0x32d   :  { %v7843_v28 = vand.u32 4294901760, %v6993_v22  ;;  %v7844_v17 = vand.u32 4294901760, %v6998_v5  ;;  %5074 = vmatpush3.bf16.msra.mxu1 %v7845_v4  ;;  %v7846_v25 = vand.u32 4294901760, %v7016_v27  ;;  %v7847_v32 = vand.u32 4294901760, %v7021_v49  ;;  %5038 = vmatpush3.bf16.msra.mxu0 %v6923_v29 }
 0x32e   :  { %5108 = vmatprep.subr.bf16.mxu1 %v6917_v6  ;;  %v7848_v4 = vand.u32 4294901760, %v7004_v12  ;;  %v7849_v41 = vand.u32 4294901760, %v7009_v30  ;;  %v5113_v38 = vpack.c.bf16 %v1737_v21, %v1730_v58  ;;  %v7850_v19 = vand.u32 4294901760, %v6615_v33  ;;  %5040 = vmatprep.subr.bf16.mxu0 %v6967_v14 }
 0x32f   :  { %v7073_v16 = vsub.f32 %v6993_v22, %v7843_v28  ;;  %v7078_v55 = vsub.f32 %v6998_v5, %v7844_v17  ;;  %v7088_v28 = vsub.f32 %v7016_v27, %v7846_v25  ;;  %v7093_v17 = vsub.f32 %v7021_v49, %v7847_v32  ;;  %v7852_v49 = vld [vmem:[#allocation22_spill] sm:$0xff] }
 0x330   :  { %v1869_v57 = vsub.f32 %v7004_v12, %v7848_v4  ;;  %v1876_v7 = vsub.f32 %v7009_v30, %v7849_v41  ;;  %v7851_v32 = vand.u32 4294901760, %v6630_v59  ;;  %v5115_v6 = vpack.c.bf16 %v1863_v23, %v1856_v0  ;;  %1594 = vmatmul.mubr.f32.vlgmr.msra.gmra.mrb[12].mxu1 %v7852_v49 }
 0x331   :  { %v1744_v62 = vand.u32 4294901760, %v1743_v43  ;;  %v1751_v4 = vand.u32 4294901760, %v1750_v53  ;;  %v1770_v41 = vand.u32 4294901760, %v7073_v16  ;;  %v1777_v45 = vand.u32 4294901760, %v7078_v55  ;;  %5110 = vmatpush3.bf16.msra.mxu1 %v6932_v40  ;;  %1936 = vmatprep.mubr.f32.mxu1 %v6981_v54 }
 0x332   :  { %v7108_v46 = vpack.c.bf16 %v7851_v32, %v7850_v19  ;;  %v7853_v25 = vand.u32 4294901760, %v7035_v44  ;;  %v7854_v33 = vand.u32 4294901760, %v7041_v35  ;;  %v7855_v19 = vand.u32 4294901760, %v7046_v36  ;;  %5112 = vmatprep.subr.bf16.mxu1 %v5111_v50  ;;  %5042 = vmatpush3.bf16.msra.mxu0 %v6973_v13 }
 0x333   :  { %v7670_v0 = vand.u32 4294901760, %v7088_v28  ;;  %v7671_v29 = vand.u32 4294901760, %v7093_v17  ;;  %v1870_v58 = vand.u32 4294901760, %v1869_v57  ;;  %v1877_v53 = vand.u32 4294901760, %v1876_v7 }
 0x334   :  { %v1698_v21 = vsub.f32 %v7035_v44, %v7853_v25  ;;  %v1757_v59 = vsub.f32 %v7041_v35, %v7854_v33  ;;  %v1764_v23 = vsub.f32 %v7046_v36, %v7855_v19  ;;  %v7856_v43 = vand.u32 4294901760, %v7056_v37  ;;  %5076 = vmatprep.subr.bf16.mxu0 %v7108_v46 }
 0x335   :  { %v7857_v14 = vand.u32 4294901760, %v7061_v11  ;;  %v7858_v32 = vand.u32 4294901760, %v6651_v1  ;;  %v7859_v33 = vand.u32 4294901760, %v6656_v20  ;;  %v7860_v50 = vand.u32 4294901760, %v6693_v31  ;;  %5114 = vmatpush3.bf16.msra.mxu1 %v5113_v38  ;;  %1490 = vmatmul.mubr.f32.vlgmr.msra.gmra.mrb[12].mxu0 %v7852_v49 }
 0x336   :  { %v1883_v40 = vsub.f32 %v7056_v37, %v7856_v43  ;;  %v7861_v7 = vand.u32 4294901760, %v6711_v9  ;;  %v5117_v43 = vpack.c.bf16 %v1751_v4, %v1744_v62  ;;  %v1778_v1 = vsub.f32 %v7078_v55, %v1777_v45  ;;  %5116 = vmatprep.subr.bf16.mxu1 %v5115_v6  ;;  %v7866_v6 = vld [vmem:[#allocation31_spill] sm:$0xff] }
 0x337   :  { %v1890_v25 = vsub.f32 %v7061_v11, %v7857_v14  ;;  %v7138_v19 = vpack.c.bf16 %v7859_v33, %v7858_v32  ;;  %v1771_v14 = vsub.f32 %v7073_v16, %v1770_v41  ;;  %v1699_v20 = vand.u32 4294901760, %v1698_v21 }
 0x338   :  { %v7144_v57 = vpack.c.bf16 %v7861_v7, %v7860_v50  ;;  %v1758_v31 = vand.u32 4294901760, %v1757_v59  ;;  %v1765_v32 = vand.u32 4294901760, %v1764_v23  ;;  %v1897_v9 = vsub.f32 %v7088_v28, %v7670_v0  ;;  %v7864_v7 = vld [vmem:[#allocation10_spill] sm:$0xff] }
 0x339   :  { %v1904_v62 = vsub.f32 %v7093_v17, %v7671_v29  ;;  %v5119_v13 = vpack.c.bf16 %v1877_v53, %v1870_v58  ;;  %v1884_v4 = vand.u32 4294901760, %v1883_v40  ;;  %v1891_v33 = vand.u32 4294901760, %v1890_v25  ;;  %5078 = vmatpush3.bf16.msra.mxu0 %v7138_v19  ;;  %1700 = vmatprep.mubr.f32.mxu0 %v1699_v20 }
 0x33a   :  { %v7862_v38 = vand.u32 4294901760, %v6754_v3  ;;  %v7863_v21 = vand.u32 4294901760, %v6783_v15  ;;  %v1772_v23 = vand.u32 4294901760, %v1771_v14  ;;  %v1779_v50 = vand.u32 4294901760, %v1778_v1  ;;  %5118 = vmatpush3.bf16.msra.mxu1 %v5117_v43  ;;  %5080 = vmatprep.subr.bf16.mxu0 %v7144_v57 }
 0x33b   :  { %v7865_v0 = vand.u32 4294901760, %v7864_v7  ;;  %v7867_v58 = vand.u32 4294901760, %v7866_v6  ;;  %v5121_v3 = vpack.c.bf16 %v1765_v32, %v1758_v31  ;;  %v7868_v15 = vand.u32 4294901760, %v6803_v34  ;;  %5120 = vmatprep.subr.bf16.mxu1 %v5119_v13 }
 0x33c   :  { %v7165_v59 = vpack.c.bf16 %v7863_v21, %v7862_v38  ;;  %v7869_v49 = vand.u32 4294901760, %v6808_v61  ;;  %v1898_v25 = vand.u32 4294901760, %v1897_v9  ;;  %v1905_v14 = vand.u32 4294901760, %v1904_v62 }
 0x33d   :  { %v1785_v29 = vsub.f32 %v7864_v7, %v7865_v0  ;;  %v1792_v53 = vsub.f32 %v7866_v6, %v7867_v58  ;;  %v5123_v1 = vpack.c.bf16 %v1891_v33, %v1884_v4  ;;  %v7870_v0 = vand.u32 4294901760, %v6595_v18 }
 0x33e   :  { %v7179_v40 = vpack.c.bf16 %v7869_v49, %v7868_v15  ;;  %v7871_v20 = vand.u32 4294901760, %v6600_v48  ;;  %v7872_v31 = vand.u32 4294901760, %v6853_v47  ;;  %v7873_v34 = vand.u32 4294901760, %v6865_v42  ;;  %5082 = vmatpush3.bf16.msra.mxu0 %v7165_v59  ;;  %5122 = vmatpush3.bf16.msra.mxu1 %v5121_v3 }
 0x33f   :  { %v1911_v38 = vsub.f32 %v6595_v18, %v7870_v0  ;;  %v5125_v61 = vpack.c.bf16 %v1779_v50, %v1772_v23  ;;  %v7874_v9 = vand.u32 4294901760, %v6892_v63  ;;  %v7875_v62 = vand.u32 4294901760, %v6897_v51  ;;  %5124 = vmatprep.subr.bf16.mxu1 %v5123_v1 }
 0x340   :  { %v1918_v43 = vsub.f32 %v6600_v48, %v7871_v20  ;;  %v7191_v32 = vpack.c.bf16 %v7873_v34, %v7872_v31  ;;  %v1786_v4 = vand.u32 4294901760, %v1785_v29  ;;  %v1793_v33 = vand.u32 4294901760, %v1792_v53  ;;  %5084 = vmatprep.subr.bf16.mxu0 %v7179_v40  ;;  %v7885_v34 = vld [vmem:[#allocation12_spill] sm:$0xff] }
 0x341   :  { %v7198_v13 = vpack.c.bf16 %v7875_v62, %v7874_v9  ;;  %v5127_v21 = vpack.c.bf16 %v1905_v14, %v1898_v25  ;;  %v7876_v47 = vand.u32 4294901760, %v6620_v52  ;;  %v7877_v58 = vand.u32 4294901760, %v6625_v10 }
 0x342   :  { %v1912_v63 = vand.u32 4294901760, %v1911_v38  ;;  %v1919_v50 = vand.u32 4294901760, %v1918_v43  ;;  %v7878_v51 = vand.u32 4294901760, %v6635_v39  ;;  %v7879_v53 = vand.u32 4294901760, %v6640_v2  ;;  %5086 = vmatpush3.bf16.msra.mxu0 %v7191_v32  ;;  %5126 = vmatpush3.bf16.msra.mxu1 %v5125_v61 }
 0x343   :  { %v1799_v42 = vsub.f32 %v6620_v52, %v7876_v47  ;;  %v1806_v23 = vsub.f32 %v6625_v10, %v7877_v58  ;;  %v7880_v15 = vand.u32 4294901760, %v6939_v60  ;;  %v7881_v49 = vand.u32 4294901760, %v6944_v8  ;;  %5088 = vmatprep.subr.bf16.mxu0 %v7198_v13  ;;  %5128 = vmatprep.subr.bf16.mxu1 %v5127_v21 }
 0x344   :  { %v1925_v29 = vsub.f32 %v6635_v39, %v7878_v51  ;;  %v1932_v3 = vsub.f32 %v6640_v2, %v7879_v53  ;;  %v5129_v14 = vpack.c.bf16 %v1793_v33, %v1786_v4  ;;  %v7882_v1 = vand.u32 4294901760, %v6956_v56  ;;  %v7892_v51 = vld [vmem:[#allocation23_spill] sm:$0xff] }
 0x345   :  { %v7218_v25 = vpack.c.bf16 %v7881_v49, %v7880_v15  ;;  %v7883_v0 = vand.u32 4294901760, %v6961_v24  ;;  %v1800_v20 = vand.u32 4294901760, %v1799_v42  ;;  %v1807_v43 = vand.u32 4294901760, %v1806_v23  ;;  %v7890_v42 = vld [vmem:[#allocation15_spill] sm:$0xff] }
 0x346   :  { %v7884_v31 = vand.u32 4294901760, %v6663_v26  ;;  %v7886_v8 = vand.u32 4294901760, %v7885_v34  ;;  %v5131_v62 = vpack.c.bf16 %v1919_v50, %v1912_v63  ;;  %v1926_v56 = vand.u32 4294901760, %v1925_v29  ;;  %5130 = vmatpush3.bf16.msra.mxu1 %v5129_v14 }
 0x347   :  { %v7224_v38 = vpack.c.bf16 %v7883_v0, %v7882_v1  ;;  %v1933_v4 = vand.u32 4294901760, %v1932_v3  ;;  %5090 = vmatpush3.bf16.msra.mxu0 %v7218_v25  ;;  %v7887_v24 = vand.u32 4294901760, %v6993_v22  ;;  %v7888_v61 = vand.u32 4294901760, %v6998_v5  ;;  %v7893_v5 = vld [vmem:[#allocation24_spill] sm:$0xff]  ;;  %v7897_v1 = vld [vmem:[#allocation27_spill] sm:$0xff] }
 0x348   :  { %v1813_v60 = vsub.f32 %v6663_v26, %v7884_v31  ;;  %v1820_v9 = vsub.f32 %v7885_v34, %v7886_v8  ;;  %v7889_v47 = vand.u32 4294901760, %v7016_v27  ;;  %v7891_v58 = vand.u32 4294901760, %v7890_v42  ;;  %5132 = vmatprep.subr.bf16.mxu1 %v5131_v62  ;;  %v7895_v27 = vld [vmem:[#allocation25_spill] sm:$0xff] }
 0x349   :  { %v7238_v33 = vpack.c.bf16 %v7888_v61, %v7887_v24  ;;  %v7247_v21 = vand.u32 4294901760, %v7892_v51  ;;  %5092 = vmatprep.subr.bf16.mxu0 %v7224_v38  ;;  %v5133_v63 = vpack.c.bf16 %v1807_v43, %v1800_v20  ;;  %v5135_v22 = vpack.c.bf16 %v1933_v4, %v1926_v56  ;;  %v7899_v20 = vld [vmem:[#allocation28_spill] sm:$0xff]  ;;  %v7905_v24 = vld [vmem:[#allocation29_spill] sm:$0xff] }
 0x34a   :  { %v7244_v23 = vpack.c.bf16 %v7891_v58, %v7889_v47  ;;  %v1814_v50 = vand.u32 4294901760, %v1813_v60  ;;  %v1821_v29 = vand.u32 4294901760, %v1820_v9  ;;  %v7894_v53 = vand.u32 4294901760, %v7893_v5  ;;  %v7901_v60 = vld [vmem:[#allocation7_spill] sm:$0xff]  ;;  %v7903_v9 = vld [vmem:[#allocation8_spill] sm:$0xff]  ;;  %v7907_v47 = vld [vmem:[#allocation30_spill] sm:$0xff] }
 0x34b   :  { %5094 = vmatpush3.bf16.msra.mxu0 %v7238_v33  ;;  %v7896_v3 = vand.u32 4294901760, %v7895_v27  ;;  %v7259_v49 = vsub.f32 %v7892_v51, %v7247_v21  ;;  %5134 = vmatpush3.bf16.msra.mxu1 %v5133_v63  ;;  %v7898_v0 = vand.u32 4294901760, %v7897_v1  ;;  %v7900_v43 = vand.u32 4294901760, %v7899_v20  ;;  %v7909_v51 = vld [vmem:[#allocation32_spill] sm:$0xff]  ;;  %v7916_v1 = vld [vmem:[#allocation39_spill] sm:$0xff] }
 0x34c   :  { %5096 = vmatprep.subr.bf16.mxu0 %v7244_v23  ;;  %v5137_v14 = vpack.c.bf16 %v1821_v29, %v1814_v50  ;;  %5136 = vmatprep.subr.bf16.mxu1 %v5135_v22  ;;  %v7902_v8 = vand.u32 4294901760, %v7901_v60  ;;  %v7904_v62 = vand.u32 4294901760, %v7903_v9  ;;  %v7906_v61 = vand.u32 4294901760, %v7905_v24  ;;  %v7911_v50 = vld [vmem:[#allocation33_spill] sm:$0xff]  ;;  %v7914_v27 = vld [vmem:[#allocation36_spill] sm:$0xff] }
 0x34d   :  { %v7255_v15 = vpack.c.bf16 %v7896_v3, %v7894_v53  ;;  %v7266_v31 = vpack.c.bf16 %v7900_v43, %v7898_v0  ;;  %v1703_v4 = vand.u32 4294901760, %v7259_v49  ;;  %v7908_v42 = vand.u32 4294901760, %v7907_v47  ;;  %v7915_v3 = vld [vmem:[#allocation37_spill] sm:$0xff]  ;;  %v7917_v0 = vld [vmem:[#allocation40_spill] sm:$0xff] }
 0x34e   :  { %v7273_v56 = vpack.c.bf16 %v7904_v62, %v7902_v8  ;;  %v7910_v63 = vand.u32 4294901760, %v7909_v51  ;;  %v7912_v29 = vand.u32 4294901760, %v7911_v50  ;;  %v7913_v53 = vand.u32 4294901760, %v7035_v44  ;;  %v7918_v60 = vld [vmem:[#allocation41_spill] sm:$0xff]  ;;  %v7919_v8 = vld [vmem:[#allocation42_spill] sm:$0xff]  ;;  %v7920_v62 = vld [vmem:[#allocation43_spill] sm:$0xff] }
 0x34f   :  { %5098 = vmatpush3.bf16.msra.mxu0 %v7255_v15  ;;  %5138 = vmatpush3.bf16.msra.mxu1 %v5137_v14  ;;  %v7282_v58 = vpack.c.bf16 %v7908_v42, %v7906_v61  ;;  %v1704_v5 = vsub.f32 %v7259_v49, %v1703_v4  ;;  %v5139_v14 = vpack.c.bf16 %v7915_v3, %v7914_v27  ;;  %v7921_v24 = vld [vmem:[#allocation44_spill] sm:$0xff]  ;;  %v7922_v47 = vld [vmem:[#allocation45_spill] sm:$0xff]  ;;  %v7923_v42 = vld [vmem:[#allocation46_spill] sm:$0xff] }
 0x350   :  { %5100 = vmatprep.subr.bf16.mxu0 %v7266_v31  ;;  %5172 = vmatprep.subr.bf16.mxu1 %v7108_v46  ;;  %v7290_v22 = vpack.c.bf16 %v7912_v29, %v7910_v63  ;;  %v5141_v20 = vpack.c.bf16 %v7917_v0, %v7916_v1  ;;  %v5143_v9 = vpack.c.bf16 %v7919_v8, %v7918_v60  ;;  %v7924_v63 = vld [vmem:[#allocation13_spill] sm:$0xff] }
 0x351   :  { %v1705_v43 = vand.u32 4294901760, %v1704_v5  ;;  %v5145_v61 = vpack.c.bf16 %v7921_v24, %v7920_v62  ;;  %v5147_v51 = vpack.c.bf16 %v7923_v42, %v7922_v47  ;;  %v7925_v50 = vld [vmem:[#allocation9_spill] sm:$0xff]  ;;  %v5153_v5 = vpack.c.bf16 %v7046_v36, %v7041_v35 }
 0x352   :  { %1938 = vmatmul.mubr.f32.vlgmr.msra.gmra.mrb[14].mxu1 %v7247_v21  ;;  %v5149_v29 = vpack.c.bf16 %v7925_v50, %v7924_v63 }
 0x353   :  { %5102 = vmatpush3.bf16.msra.mxu0 %v7273_v56  ;;  %5174 = vmatpush3.bf16.msra.mxu1 %v7138_v19 }
 0x354   :  { %2180 = vmatprep.mubr.f32.mxu1 %v7913_v53  ;;  %5104 = vmatprep.subr.bf16.mxu0 %v7282_v58  ;;  %v5155_v53 = vpack.c.bf16 %v7061_v11, %v7056_v37 }
 0x355   :  { %5176 = vmatprep.subr.bf16.mxu1 %v7144_v57 }
 0x357   :  { %5106 = vmatpush3.bf16.msra.mxu0 %v7290_v22  ;;  %5178 = vmatpush3.bf16.msra.mxu1 %v7165_v59 }
 0x358   :  { %5140 = vmatprep.subr.bf16.mxu0 %v5139_v14  ;;  %5180 = vmatprep.subr.bf16.mxu1 %v7179_v40  ;;  %v5157_v14 = vpack.c.bf16 %v7078_v55, %v7073_v16  ;;  %v7946_v16 = vld [vmem:[#allocation11_spill] sm:$0xff] }
 0x359   :  { %v7949_v55 = vld [vmem:[#allocation35_spill] sm:$0xff] }
 0x35a   :  { %1706 = vmatmul.mubr.f32.vlgmr.msra.gmra.mrb[14].mxu0 %v1705_v43  ;;  %v5161_v43 = vpack.c.bf16 %v7866_v6, %v7864_v7  ;;  %v5167_v7 = vpack.c.bf16 %v6640_v2, %v6635_v39  ;;  %v5169_v6 = vpack.c.bf16 %v7885_v34, %v6663_v26  ;;  %v7928_v39 = vand.u32 4294901760, %v7916_v1 }
 0x35b   :  { %5142 = vmatpush3.bf16.msra.mxu0 %v5141_v20  ;;  %2073 = vmatprep.mubr.f32.mxu0 %v7035_v44  ;;  %v5151_v44 = vpack.c.bf16 %v7009_v30, %v7004_v12  ;;  %v5159_v20 = vpack.c.bf16 %v7093_v17, %v7088_v28  ;;  %v7930_v26 = vand.u32 4294901760, %v7918_v60  ;;  %v7933_v34 = vand.u32 4294901760, %v7921_v24 }
 0x35c   :  { %5182 = vmatpush3.bf16.msra.mxu1 %v7191_v32  ;;  %5144 = vmatprep.subr.bf16.mxu0 %v5143_v9  ;;  %v5163_v9 = vpack.c.bf16 %v6600_v48, %v6595_v18  ;;  %v7926_v18 = vand.u32 4294901760, %v7914_v27  ;;  %v7935_v27 = vand.u32 4294901760, %v7923_v42  ;;  %v7938_v1 = vand.u32 4294901760, %v7004_v12 }
 0x35d   :  { %5184 = vmatprep.subr.bf16.mxu1 %v7198_v13  ;;  %v7940_v60 = vand.u32 4294901760, %v7041_v35  ;;  %v5221_v12 = vpack.c.bf16 %v1777_v45, %v1770_v41  ;;  %v7950_v45 = vld [vmem:[#allocation38_spill] sm:$0xff] }
 0x35f   :  { %5146 = vmatpush3.bf16.msra.mxu0 %v5145_v61  ;;  %v5165_v61 = vpack.c.bf16 %v6625_v10, %v6620_v52  ;;  %v7927_v52 = vand.u32 4294901760, %v7915_v3  ;;  %v7929_v10 = vand.u32 4294901760, %v7917_v0 }
 0x360   :  { %5186 = vmatpush3.bf16.msra.mxu1 %v7218_v25  ;;  %5148 = vmatprep.subr.bf16.mxu0 %v5147_v51 }
 0x361   :  { %5188 = vmatprep.subr.bf16.mxu1 %v7224_v38  ;;  %v5203_v48 = vpack.c.bf16 %v7927_v52, %v7926_v18  ;;  %v5205_v2 = vpack.c.bf16 %v7929_v10, %v7928_v39 }
 0x363   :  { %5150 = vmatpush3.bf16.msra.mxu0 %v5149_v29 }
 0x364   :  { %5190 = vmatpush3.bf16.msra.mxu1 %v7238_v33  ;;  %5152 = vmatprep.subr.bf16.mxu0 %v5151_v44  ;;  %v5486_v44 = vmov 0.0  }
 0x365   :  { %5192 = vmatprep.subr.bf16.mxu1 %v7244_v23 }
 0x367   :  { %5154 = vmatpush3.bf16.msra.mxu0 %v5153_v5 }
 0x368   :  { %5194 = vmatpush3.bf16.msra.mxu1 %v7255_v15  ;;  %5156 = vmatprep.subr.bf16.mxu0 %v5155_v53 }
 0x369   :  { %5196 = vmatprep.subr.bf16.mxu1 %v7266_v31 }
 0x36b   :  { %5158 = vmatpush3.bf16.msra.mxu0 %v5157_v14 }
 0x36c   :  { %5198 = vmatpush3.bf16.msra.mxu1 %v7273_v56  ;;  %5160 = vmatprep.subr.bf16.mxu0 %v5159_v20 }
 0x36d   :  { %5200 = vmatprep.subr.bf16.mxu1 %v7282_v58 }
 0x36f   :  { %5162 = vmatpush3.bf16.msra.mxu0 %v5161_v43 }
 0x370   :  { %5202 = vmatpush3.bf16.msra.mxu1 %v7290_v22  ;;  %5164 = vmatprep.subr.bf16.mxu0 %v5163_v9 }
 0x371   :  { %5236 = vmatprep.subr.bf16.mxu1 %v7108_v46  ;;  %v7931_v46 = vand.u32 4294901760, %v7919_v8 }
 0x373   :  { %2184 = vmatmul.mubr.f32.vlgmr.msra.gmra.mrb[16].mxu1 %v1703_v4  ;;  %5166 = vmatpush3.bf16.msra.mxu0 %v5165_v61 }
 0x374   :  { %5238 = vmatpush3.bf16.msra.mxu1 %v7138_v19  ;;  %2454 = vmatprep.mubr.f32.mxu1 %v6981_v54  ;;  %v5207_v19 = vpack.c.bf16 %v7931_v46, %v7930_v26 }
 0x375   :  { %5168 = vmatprep.subr.bf16.mxu0 %v5167_v7  ;;  %5240 = vmatprep.subr.bf16.mxu1 %v7144_v57  ;;  %v7932_v57 = vand.u32 4294901760, %v7920_v62  ;;  %v7942_v62 = vand.u32 4294901760, %v7056_v37  ;;  %v7947_v37 = vld [vmem:[#allocation14_spill] sm:$0xff] }
 0x376   :  { %v2462_v7 = vld [vmem:[%s7539_s9] sm:$0xf] }
 0x377   :  { %5170 = vmatpush3.bf16.msra.mxu0 %v5169_v6  ;;  %v5209_v4 = vpack.c.bf16 %v7933_v34, %v7932_v57  ;;  %2465 = vperm.xlu1 %5443, %v2462_v7  }
 0x378   :  { %5242 = vmatpush3.bf16.msra.mxu1 %v7165_v59  ;;  %5204 = vmatprep.subr.bf16.mxu0 %v5203_v48  ;;  %v7934_v59 = vand.u32 4294901760, %v7922_v47 }
 0x379   :  { %5244 = vmatprep.subr.bf16.mxu1 %v7179_v40  ;;  %v7936_v40 = vand.u32 4294901760, %v7924_v63 }
 0x37a   :  { %2076 = vmatmul.mubr.f32.vlgmr.msra.gmra.mrb[16].mxu0 %v7259_v49  ;;  %v5211_v3 = vpack.c.bf16 %v7935_v27, %v7934_v59 }
 0x37b   :  { %5206 = vmatpush3.bf16.msra.mxu0 %v5205_v2  ;;  %2350 = vmatprep.mubr.f32.mxu0 %v6981_v54  ;;  %v7937_v54 = vand.u32 4294901760, %v7925_v50 }
 0x37c   :  { %5246 = vmatpush3.bf16.msra.mxu1 %v7191_v32  ;;  %5208 = vmatprep.subr.bf16.mxu0 %v5207_v19  ;;  %v7939_v32 = vand.u32 4294901760, %v7009_v30  ;;  %v7945_v30 = vand.u32 4294901760, %v7093_v17 }
 0x37d   :  { %5248 = vmatprep.subr.bf16.mxu1 %v7198_v13  ;;  %v5213_v49 = vpack.c.bf16 %v7937_v54, %v7936_v40  ;;  %v7941_v13 = vand.u32 4294901760, %v7046_v36  ;;  %v7944_v36 = vand.u32 4294901760, %v7088_v28  ;;  %v2461_v40 = vld [vmem:[%s7538_s8] sm:$0xf] }
 0x37e   :  { %v5215_v0 = vpack.c.bf16 %v7939_v32, %v7938_v1  ;;  %v2470_v54 = vsel %vm2468_vm11, %v2461_v40, 0 }
 0x37f   :  { %5210 = vmatpush3.bf16.msra.mxu0 %v5209_v4  ;;  %v5217_v8 = vpack.c.bf16 %v7941_v13, %v7940_v60  ;;  %v5223_v35 = vpack.c.bf16 %v7945_v30, %v7944_v36 }
 0x380   :  { %5250 = vmatpush3.bf16.msra.mxu1 %v7218_v25  ;;  %5212 = vmatprep.subr.bf16.mxu0 %v5211_v3  ;;  %v7943_v25 = vand.u32 4294901760, %v7061_v11  ;;  %v7948_v11 = vld [vmem:[#allocation34_spill] sm:$0xff] }
 0x381   :  { %5252 = vmatprep.subr.bf16.mxu1 %v7224_v38 }
 0x382   :  { %v5219_v24 = vpack.c.bf16 %v7943_v25, %v7942_v62 }
 0x383   :  { %5214 = vmatpush3.bf16.msra.mxu0 %v5213_v49  ;;  %v2538_v49 = vand.u32 4294901760, %v2470_v54 }
 0x384   :  { %5254 = vmatpush3.bf16.msra.mxu1 %v7238_v33  ;;  %5216 = vmatprep.subr.bf16.mxu0 %v5215_v0 }
 0x385   :  { %5256 = vmatprep.subr.bf16.mxu1 %v7244_v23  ;;  %v2539_v60 = vsub.f32 %v2470_v54, %v2538_v49 }
 0x387   :  { %5218 = vmatpush3.bf16.msra.mxu0 %v5217_v8  ;;  %v2540_v13 = vand.u32 4294901760, %v2539_v60 }
 0x388   :  { %5258 = vmatpush3.bf16.msra.mxu1 %v7255_v15  ;;  %5220 = vmatprep.subr.bf16.mxu0 %v5219_v24  ;;  %v735_v15 = vpop.permute.xlu0 %734 }
 0x389   :  { %5260 = vmatprep.subr.bf16.mxu1 %v7266_v31  ;;  %v2541_v24 = vsub.f32 %v2539_v60, %v2540_v13 }
 0x38b   :  { %5222 = vmatpush3.bf16.msra.mxu0 %v5221_v12  ;;  %v2542_v30 = vand.u32 4294901760, %v2541_v24 }
 0x38c   :  { %5262 = vmatpush3.bf16.msra.mxu1 %v7273_v56  ;;  %5224 = vmatprep.subr.bf16.mxu0 %v5223_v35 }
 0x38d   :  { %5264 = vmatprep.subr.bf16.mxu1 %v7282_v58 }
 0x38f   :  { %5226 = vmatpush3.bf16.msra.mxu0 %v7946_v16 }
 0x390   :  { %5266 = vmatpush3.bf16.msra.mxu1 %v7290_v22  ;;  %5228 = vmatprep.subr.bf16.mxu0 %v7947_v37 }
 0x391   :  { %4853 = vmatprep.subr.mxu1 %v5486_v44 }
 0x393   :  { %2456 = vmatmul.mubr.f32.vlgmr.msra.gmra.mrb[18].mxu1 %v7247_v21  ;;  %5230 = vmatpush3.bf16.msra.mxu0 %v7948_v11 }
 0x394   :  { %5232 = vmatprep.subr.bf16.mxu0 %v7949_v55  ;;  %4855 = vmatprep.mubr.msk.f32.mxu1 %vm5487_vm10, %v5486_v44 }
 0x397   :  { %5234 = vmatpush3.bf16.msra.mxu0 %v7950_v45  ;;  %v2919_v45 = vld [vmem:[%s7540_s10] sm:$0xff] }
 0x398   :  { %4823 = vmatprep.subr.mxu0 %v5486_v44 }
 0x39a   :  { %2352 = vmatmul.mubr.f32.vlgmr.msra.gmra.mrb[18].mxu0 %v7247_v21 }
 0x39b   :  { %4825 = vmatprep.mubr.msk.f32.mxu0 %vm5487_vm10, %v5486_v44 }
 0x3be   :  { %v4446_v28 = vpop.f32.mrb[8].mxu1 }
 0x3bf   :  { %v4447_v17 = vpop.f32.mrb[9].mxu1 }
 0x3c0   :  { %v4448_v41 = vadd.f32 %v4447_v17, %v4446_v28  ;;  %v2928_v28 = vsel %vm2926_vm12, %v2919_v45, 0 }
 0x3c1   :  { %v2999_v17 = vand.u32 4294901760, %v2928_v28 }
 0x3c6   :  { %v4411_v38 = vpop.f32.mrb[8].mxu0 }
 0x3c7   :  { %v4412_v33 = vpop.f32.mrb[9].mxu0 }
 0x3c8   :  { %v4413_v23 = vadd.f32 %v4412_v33, %v4411_v38 }
 0x3ca   :  { %v846_v31 = vadd.f32 %v4413_v23, %v735_v15 }
 0x3cc   :  { %v1078_v56 = vadd.f32 %v4448_v41, %v846_v31  ;;  %v3000_v41 = vsub.f32 %v2928_v28, %v2999_v17 }
 0x3ce   :  { %v3001_v38 = vand.u32 4294901760, %v3000_v41 }
 0x3de   :  { %v4516_v58 = vpop.f32.mrb[10].mxu1 }
 0x3df   :  { %v4517_v22 = vpop.f32.mrb[11].mxu1 }
 0x3e0   :  { %v4518_v47 = vadd.f32 %v4517_v22, %v4516_v58 }
 0x3e7   :  { %v4481_v42 = vpop.f32.mrb[10].mxu0 }
 0x3e8   :  { %v4482_v51 = vpop.f32.mrb[11].mxu0 }
 0x3e9   :  { %v4483_v63 = vadd.f32 %v4482_v51, %v4481_v42 }
 0x3eb   :  { %v1216_v50 = vadd.f32 %v4483_v63, %v1078_v56  ;;  %v3002_v56 = vsub.f32 %v3000_v41, %v3001_v38 }
 0x3ed   :  { %v1324_v29 = vadd.f32 %v4518_v47, %v1216_v50  ;;  %v3003_v47 = vand.u32 4294901760, %v3002_v56  ;;  %v5450_v56 = vld [vmem:[%s7530_s0 + $0x10] sm:$0xff] }
 0x3f6   :  { %v2466_v33 = vpop.permute.xlu1 %2465 }
 0x403   :  { %v4586_v21 = vpop.f32.mrb[12].mxu1 }
 0x404   :  { %v4587_v5 = vpop.f32.mrb[13].mxu1 }
 0x405   :  { %v4588_v53 = vadd.f32 %v4587_v5, %v4586_v21  ;;  %v5488_v21 = vmov 1983009808  }
 0x406   :  { %v3390_v5 = vunpack.c.l.s4 %v5488_v21 }
 0x408   :  { %v4551_v14 = vpop.f32.mrb[12].mxu0 }
 0x409   :  { %v4552_v20 = vpop.f32.mrb[13].mxu0 }
 0x40a   :  { %v4553_v43 = vadd.f32 %v4552_v20, %v4551_v14  ;;  %v3391_v14 = vunpack.c.0.s8 %v3390_v5 }
 0x40c   :  { %v1492_v9 = vadd.f32 %v4553_v43, %v1324_v29  ;;  %v7951_v43 = vld [vmem:[#allocation6_spill] sm:$0xff] }
 0x40e   :  { %v1596_v61 = vadd.f32 %v4588_v53, %v1492_v9  ;;  %v3386_v53 = vld [vmem:[%s7533_s3] sm:$0xff]  ;;  %v3394_v9 = vsub.s32 %v3391_v14, %v7951_v43  ;;  %s5489_s3 = smov [#allocation3]  }
 0x40f   :  { %v3388_v20 = vcombine.high %v3386_v53, %v3386_v53  ;;  %s4362_s20 = sshll.u32 %s5489_s3, 4  ;;  %s4363_s20 = int_to_ptr.vmem [resolvable:$true] %s4362_s20 }
 0x410   :  { %s5453_s7 = scalar_lea.vmem %s4363_s20, 512  ;;  %p5458_p1 = scmp.lt.s32.totalorder %s4363_s20, %s4363_s20 }
 0x411   :  { %v3402_v7 = vrot.slane %v3388_v20, %v3394_v9  ;;  %p5454_p0 = scmp.ne.s32.totalorder %s4363_s20, %s5453_s7  ;;  %p5459_p2 = scmp.lt.s32.totalorder %s5453_s7, %s5453_s7 }
 0x413   :  { %p5460_p3 = por %p5459_p2, %p5458_p1 }
 0x415   :  { %p5461_p4 = pnand %p5460_p3, %p5454_p0 }
 0x425   :  { %v4656_v6 = vpop.f32.mrb[14].mxu1 }
 0x426   :  { %v4657_v18 = vpop.f32.mrb[15].mxu1 }
 0x427   :  { %v4658_v52 = vadd.f32 %v4657_v18, %v4656_v6  ;;  %v3404_v18 = vcombine.high %v3402_v7, %v3402_v7 }
 0x42d   :  { %v4621_v48 = vpop.f32.mrb[14].mxu0 }
 0x42e   :  { %v4622_v39 = vpop.f32.mrb[15].mxu0 }
 0x42f   :  { %v4623_v10 = vadd.f32 %v4622_v39, %v4621_v48  ;;  %v3414_v48 = vsel %vm3409_vm13, %v3402_v7, 0 }
 0x431   :  { %v1708_v2 = vadd.f32 %v4623_v10, %v1596_v61  ;;  %v3395_v61 = vrot.slane %v3386_v53, %v3394_v9  ;;  %v3416_v10 = vsel %vm3409_vm13, %v3404_v18, 0 }
 0x433   :  { %v1940_v26 = vadd.f32 %v4658_v52, %v1708_v2  ;;  %v3403_v6 = vcombine.high %v3395_v61, %v3395_v61  ;;  %v3410_v52 = vsel %vm3409_vm13, %v3395_v61, 0 }
 0x434   :  { %v7471_v2 = vand.u32 4294901760, %v3410_v52 }
 0x435   :  { %v3412_v39 = vsel %vm3409_vm13, %v3403_v6, 0 }
 0x446   :  { %v4726_v46 = vpop.f32.mrb[16].mxu1 }
 0x447   :  { %v4727_v19 = vpop.f32.mrb[17].mxu1 }
 0x448   :  { %v4728_v57 = vadd.f32 %v4727_v19, %v4726_v46  ;;  %v7475_v46 = vand.u32 4294901760, %v3412_v39  ;;  %v7477_v19 = vand.u32 4294901760, %v3416_v10 }
 0x44d   :  { %v4691_v34 = vpop.f32.mrb[16].mxu0 }
 0x44e   :  { %v4692_v4 = vpop.f32.mrb[17].mxu0 }
 0x44f   :  { %v4693_v59 = vadd.f32 %v4692_v4, %v4691_v34  ;;  %v3962_v34 = vsub.f32 %v3416_v10, %v7477_v19 }
 0x451   :  { %v2078_v27 = vadd.f32 %v4693_v59, %v1940_v26  ;;  %v7473_v26 = vand.u32 4294901760, %v3414_v48  ;;  %v3963_v59 = vand.u32 4294901760, %v3962_v34 }
 0x453   :  { %v2186_v3 = vadd.f32 %v4728_v57, %v2078_v27  ;;  %v3497_v57 = vsub.f32 %v3412_v39, %v7475_v46  ;;  %v3968_v24 = vsub.f32 %v3414_v48, %v7473_v26 }
 0x455   :  { %v3498_v4 = vand.u32 4294901760, %v3497_v57 }
 0x457   :  { %v3499_v27 = vsub.f32 %v3497_v57, %v3498_v4 }
 0x459   :  { %v3500_v40 = vand.u32 4294901760, %v3499_v27 }
 0x466   :  { %v4796_v1 = vpop.f32.mrb[18].mxu1 }
 0x467   :  { %v4797_v32 = vpop.f32.mrb[19].mxu1 }
 0x468   :  { %v4798_v0 = vadd.f32 %v4797_v32, %v4796_v1 }
 0x46d   :  { %v4761_v8 = vpop.f32.mrb[18].mxu0 }
 0x46e   :  { %v4762_v62 = vpop.f32.mrb[19].mxu0 }
 0x46f   :  { %v4763_v25 = vadd.f32 %v4762_v62, %v4761_v8  ;;  %v3503_v62 = vsub.f32 %v3410_v52, %v7471_v2 }
 0x471   :  { %v2354_v12 = vadd.f32 %v4763_v25, %v2186_v3  ;;  %v3964_v3 = vsub.f32 %v3962_v34, %v3963_v59 }
 0x473   :  { %v7427_v36 = vadd.f32 %v4798_v0, %v2354_v12  ;;  %v3965_v54 = vand.u32 4294901760, %v3964_v3 }
 0x475   :  { %v2473_v35 = vand.u32 4294901760, %v7427_v36 }
 0x477   :  { %4824 = vmatpush3.msra.mxu0 %v2473_v35  ;;  %v2550_v16 = vsub.f32 %v7427_v36, %v2473_v35 }
 0x478   :  { %4826 = vmatmul.mubr.f32.vlgmr.msra.gmra.mrb[20].mxu0 %v2542_v30  ;;  %4828 = vmatprep.subr.mxu0 %v5486_v44 }
 0x479   :  { %v2551_v37 = vand.u32 4294901760, %v2550_v16  ;;  %4830 = vmatprep.mubr.msk.f32.mxu0 %vm5487_vm10, %v5486_v44 }
 0x47b   :  { %v2552_v11 = vsub.f32 %v2550_v16, %v2551_v37 }
 0x47d   :  { %v2553_v55 = vand.u32 4294901760, %v2552_v11 }
 0x47f   :  { %4829 = vmatpush3.msra.mxu0 %v2553_v55 }
 0x480   :  { %4831 = vmatmul.mubr.f32.vlgmr.msra.gmra.mrb[20].mxu0 %v2538_v49  ;;  %4833 = vmatprep.subr.mxu0 %v5486_v44 }
 0x481   :  { %4834 = vmatpush3.msra.mxu0 %v2550_v16  ;;  %4835 = vmatprep.mubr.msk.f32.mxu0 %vm5487_vm10, %v5486_v44 }
 0x482   :  { %4838 = vmatprep.subr.mxu0 %v5486_v44 }
 0x488   :  { %4836 = vmatmul.mubr.f32.vlgmr.msra.gmra.mrb[20].mxu0 %v2539_v60 }
 0x489   :  { %4839 = vmatpush3.msra.mxu0 %v2473_v35  ;;  %4840 = vmatprep.mubr.msk.f32.mxu0 %vm5487_vm10, %v5486_v44 }
 0x48a   :  { %4843 = vmatprep.subr.mxu0 %v5486_v44 }
 0x490   :  { %4841 = vmatmul.mubr.f32.vlgmr.msra.gmra.mrb[20].mxu0 %v2540_v13 }
 0x491   :  { %4844 = vmatpush3.msra.mxu0 %v2551_v37  ;;  %4845 = vmatprep.mubr.msk.f32.mxu0 %vm5487_vm10, %v5486_v44  ;;  %v3969_v37 = vand.u32 4294901760, %v3968_v24 }
 0x492   :  { %4848 = vmatprep.subr.mxu0 %v5486_v44 }
 0x493   :  { %v3970_v28 = vsub.f32 %v3968_v24, %v3969_v37 }
 0x498   :  { %4846 = vmatmul.mubr.f32.vlgmr.msra.gmra.mrb[20].mxu0 %v2538_v49 }
 0x499   :  { %4849 = vmatpush3.msra.mxu0 %v2473_v35  ;;  %4850 = vmatprep.mubr.msk.f32.mxu0 %vm5487_vm10, %v5486_v44  ;;  %v3504_v35 = vand.u32 4294901760, %v3503_v62 }
 0x49a   :  { %3419 = vmatprep.subr.mxu0 %v7475_v46 }
 0x49b   :  { %v3505_v55 = vsub.f32 %v3503_v62, %v3504_v35 }
 0x4a0   :  { %4851 = vmatmul.mubr.f32.vlgmr.msra.gmra.mrb[20].mxu0 %v2538_v49  ;;  %v2924_v49 = vpop.permute.xlu0 %2923 }
 0x4a1   :  { %3484 = vmatprep.mubr.f32.mxu0 %v5486_v44  ;;  %3421 = vmatpush1.msra.mxu0 %v7471_v2 }
 0x4a2   :  { %3501 = vmatprep.subr.mxu0 %v3500_v40 }
 0x573   :  { %v2914_v23 = vpop.f32.mrb[20].mxu0 }
 0x574   :  { %v5267_v15 = vadd.f32 %v2914_v23, %v2466_v33  ;;  %v4852_v31 = vpop.f32.mrb[21].mxu0  ;;  %v3971_v33 = vand.u32 4294901760, %v3970_v28 }
 0x576   :  { %v2918_v58 = vmax.f32 %v5267_v15, 0.0  ;;  %v5449_v15 = vld [vmem:[%s7530_s0] sm:$0xff] }
 0x578   :  { %v2931_v22 = vsel %vm257_vm8, %v2918_v58, 0 }
 0x579   :  { %v2934_v42 = vand.u32 4294901760, %v2931_v22 }
 0x57b   :  { %v3011_v51 = vsub.f32 %v2931_v22, %v2934_v42  ;;  %4854 = vmatpush3.msra.mxu1 %v2934_v42 }
 0x57c   :  { %4856 = vmatmul.mubr.f32.vlgmr.msra.gmra.mrb[20].mxu1 %v3003_v47  ;;  %4858 = vmatprep.subr.mxu1 %v5486_v44 }
 0x57d   :  { %v3012_v63 = vand.u32 4294901760, %v3011_v51  ;;  %4860 = vmatprep.mubr.msk.f32.mxu1 %vm5487_vm10, %v5486_v44 }
 0x57f   :  { %v3013_v50 = vsub.f32 %v3011_v51, %v3012_v63 }
 0x581   :  { %v3014_v29 = vand.u32 4294901760, %v3013_v50 }
 0x583   :  { %4859 = vmatpush3.msra.mxu1 %v3014_v29 }
 0x584   :  { %4861 = vmatmul.mubr.f32.vlgmr.msra.gmra.mrb[20].mxu1 %v2999_v17  ;;  %4863 = vmatprep.subr.mxu1 %v5486_v44 }
 0x585   :  { %4864 = vmatpush3.msra.mxu1 %v3011_v51  ;;  %4865 = vmatprep.mubr.msk.f32.mxu1 %vm5487_vm10, %v5486_v44  ;;  %v5452_v51 = vld [vmem:[%s7530_s0 + $0x18] sm:$0xff] }
 0x586   :  { %4868 = vmatprep.subr.mxu1 %v5486_v44 }
 0x58c   :  { %4866 = vmatmul.mubr.f32.vlgmr.msra.gmra.mrb[20].mxu1 %v3000_v41  ;;  %v3506_v41 = vand.u32 4294901760, %v3505_v55 }
 0x58d   :  { %4869 = vmatpush3.msra.mxu1 %v2934_v42  ;;  %4870 = vmatprep.mubr.msk.f32.mxu1 %vm5487_vm10, %v5486_v44 }
 0x58e   :  { %4873 = vmatprep.subr.mxu1 %v5486_v44 }
 0x594   :  { %4871 = vmatmul.mubr.f32.vlgmr.msra.gmra.mrb[20].mxu1 %v3001_v38 }
 0x595   :  { %4874 = vmatpush3.msra.mxu1 %v3012_v63  ;;  %4875 = vmatprep.mubr.msk.f32.mxu1 %vm5487_vm10, %v5486_v44 }
 0x596   :  { %4878 = vmatprep.subr.mxu1 %v5486_v44 }
 0x59c   :  { %4876 = vmatmul.mubr.f32.vlgmr.msra.gmra.mrb[20].mxu1 %v2999_v17 }
 0x59d   :  { %4879 = vmatpush3.msra.mxu1 %v2934_v42  ;;  %4880 = vmatprep.mubr.msk.f32.mxu1 %vm5487_vm10, %v5486_v44 }
 0x59e   :  { %3884 = vmatprep.subr.mxu1 %v7477_v19 }
 0x5a4   :  { %4881 = vmatmul.mubr.f32.vlgmr.msra.gmra.mrb[20].mxu1 %v2999_v17 }
 0x5a5   :  { %3949 = vmatprep.mubr.f32.mxu1 %v5486_v44  ;;  %3886 = vmatpush1.msra.mxu1 %v7473_v26 }
 0x5a6   :  { %3966 = vmatprep.subr.mxu1 %v3965_v54 }
 0x677   :  { %v3375_v1 = vpop.f32.mrb[20].mxu1 }
 0x678   :  { %v5268_v32 = vadd.f32 %v3375_v1, %v2924_v49  ;;  %v4882_v0 = vpop.f32.mrb[21].mxu1 }
 0x67a   :  { %v4378_v60 = vmul.f32 -1.442695, %v5268_v32 }
 0x67c   :  { %5445 = vpow2.f32 %v4378_v60 }
 0x686   :  { %v5446_v13 = vpop.eup %5445 }
 0x687   :  { %v3382_v8 = vadd.f32 1.0, %v5446_v13 }
 0x689   :  { %5447 = vrcp.f32 %v3382_v8 }
 0x693   :  { %v5448_v25 = vpop.eup %5447 }
 0x694   :  { %v3385_v12 = vmul.f32 %v5448_v25, %v7427_v36 }
 0x696   :  { %v3407_v30 = vsel %vm3405_vm14, %v3385_v12, 0 }
 0x697   :  { %v3485_v16 = vand.u32 4294901760, %v3407_v30 }
 0x699   :  { %v3486_v11 = vsub.f32 %v3407_v30, %v3485_v16 }
 0x69b   :  { %v3487_v45 = vand.u32 4294901760, %v3486_v11 }
 0x69d   :  { %v3488_v17 = vsub.f32 %v3486_v11, %v3487_v45 }
 0x69f   :  { %v3489_v38 = vand.u32 4294901760, %v3488_v17 }
 0x6a1   :  { %3490 = vmatmul.mubr.f32.vlgmr.msra.gmra.mrb[22].mxu0 %v3489_v38  ;;  %3955 = vmatmul.mubr.f32.vlgmr.msra.gmra.mrb[22].mxu1 %v3489_v38 }
 0x6a2   :  { %3507 = vmatpush1.msra.mxu0 %v3506_v41  ;;  %3570 = vmatprep.mubr.f32.mxu0 %v5486_v44 }
 0x6a3   :  { %3972 = vmatpush1.msra.mxu1 %v3971_v33  ;;  %4035 = vmatprep.mubr.f32.mxu1 %v5486_v44 }
 0x6a4   :  { %3580 = vmatprep.subr.mxu0 %v3497_v57  ;;  %4045 = vmatprep.subr.mxu1 %v3962_v34 }
 0x6a9   :  { %3572 = vmatmul.mubr.f32.vlgmr.msra.gmra.mrb[22].mxu0 %v3485_v16  ;;  %4037 = vmatmul.mubr.f32.vlgmr.msra.gmra.mrb[22].mxu1 %v3485_v16 }
 0x6aa   :  { %3583 = vmatpush1.msra.mxu0 %v3503_v62  ;;  %3646 = vmatprep.mubr.f32.mxu0 %v5486_v44 }
 0x6ab   :  { %4048 = vmatpush1.msra.mxu1 %v3968_v24  ;;  %4111 = vmatprep.mubr.f32.mxu1 %v5486_v44 }
 0x6ac   :  { %3656 = vmatprep.subr.mxu0 %v7475_v46  ;;  %4121 = vmatprep.subr.mxu1 %v7477_v19 }
 0x6b1   :  { %3649 = vmatmul.mubr.f32.vlgmr.msra.gmra.mrb[22].mxu0 %v3486_v11  ;;  %4114 = vmatmul.mubr.f32.vlgmr.msra.gmra.mrb[22].mxu1 %v3486_v11 }
 0x6b2   :  { %3658 = vmatpush1.msra.mxu0 %v7471_v2  ;;  %3721 = vmatprep.mubr.f32.mxu0 %v5486_v44 }
 0x6b3   :  { %4123 = vmatpush1.msra.mxu1 %v7473_v26  ;;  %4186 = vmatprep.mubr.f32.mxu1 %v5486_v44 }
 0x6b4   :  { %3734 = vmatprep.subr.mxu0 %v3498_v4  ;;  %4199 = vmatprep.subr.mxu1 %v3963_v59 }
 0x6b9   :  { %3725 = vmatmul.mubr.f32.vlgmr.msra.gmra.mrb[22].mxu0 %v3487_v45  ;;  %4190 = vmatmul.mubr.f32.vlgmr.msra.gmra.mrb[22].mxu1 %v3487_v45 }
 0x6ba   :  { %3738 = vmatpush1.msra.mxu0 %v3504_v35  ;;  %3801 = vmatprep.mubr.f32.mxu0 %v5486_v44 }
 0x6bb   :  { %4203 = vmatpush1.msra.mxu1 %v3969_v37  ;;  %4266 = vmatprep.mubr.f32.mxu1 %v5486_v44 }
 0x6bc   :  { %3810 = vmatprep.subr.mxu0 %v7475_v46  ;;  %4275 = vmatprep.subr.mxu1 %v7477_v19 }
 0x6c1   :  { %3803 = vmatmul.mubr.f32.vlgmr.msra.gmra.mrb[22].mxu0 %v3485_v16  ;;  %4268 = vmatmul.mubr.f32.vlgmr.msra.gmra.mrb[22].mxu1 %v3485_v16 }
 0x6c2   :  { %3812 = vmatpush1.msra.mxu0 %v7471_v2  ;;  %3875 = vmatprep.mubr.f32.mxu0 %v5486_v44 }
 0x6c3   :  { %4277 = vmatpush1.msra.mxu1 %v7473_v26  ;;  %4340 = vmatprep.mubr.f32.mxu1 %v5486_v44  ;;  %v5451_v44 = vld [vmem:[%s7530_s0 + $0x8] sm:$0xff] }
 0x6c9   :  { %3877 = vmatmul.mubr.f32.vlgmr.msra.gmra.mrb[22].mxu0 %v3485_v16  ;;  %4342 = vmatmul.mubr.f32.vlgmr.msra.gmra.mrb[22].mxu1 %v3485_v16 }
 0x79c   :  { %v3878_v36 = vpop.f32.mrb[22].mxu0  ;;  %v4343_v23 = vpop.f32.mrb[22].mxu1 }
 0x79d   :  { %v4348_v31 = vadd.f32 %v5449_v15, %v3878_v36  ;;  %v4350_v58 = vadd.f32 %v5450_v56, %v4343_v23  ;;  %v3880_v22 = vpop.f32.mrb[23].mxu0  ;;  %v4345_v47 = vpop.f32.mrb[23].mxu1 }
 0x79e   :  { %v4349_v42 = vadd.f32 %v5451_v44, %v3880_v22  ;;  %v4351_v63 = vadd.f32 %v5452_v51, %v4345_v47 }
 0x79f   :  { %4352 = vst [vmem:[#allocation3] sm:$0xff] %v4348_v31  ;;  %4354 = vst [vmem:[#allocation3 + $0x10] sm:$0xff] %v4350_v58 }
 0x7a0   :  { %4353 = vst [vmem:[#allocation3 + $0x8] sm:$0xff] %v4349_v42  ;;  %4355 = vst [vmem:[#allocation3 + $0x18] sm:$0xff] %v4351_v63 }
 0x7a1   :  { %5464 = shalt.err (!%p5461_p4)
}
 0x7a2   :  { %s5465_s27 = scalar_lea.hbm %s7542_s12, 512 }
 0x7a3   :  { %p5466_p5 = scmp.ne.s32.totalorder %s7542_s12, %s5465_s27  ;;  %p5469_p6 = scmp.lt.u32.totalorder %s5465_s27, %s7542_s12 }
 0x7a5   :  { %p5471_p7 = pnand %p5469_p6, %p5466_p5 }
 0x7a7   :  { %5474 = shalt.err (!%p5471_p7)
}
 0x7a8   :  { %4365 = dma.vmem_to_hbm [thread:$0]  %s4363_s20, 512, %s7542_s12, [#allocation4]  }
 0x7a9   :  { %5475 = dma.done.wait [#allocation4], 512  }
 0x7aa   :  { %5476 = vsyncadd [#allocation4], 4294966784 }
 0x7ab   :  { %4369 = vsyncpa [#allocation4], 1 }

</bundles_post_ra>
